<compile_context>
chip_gen: v7x
topology: tpu7x:2x2x1
jax: 0.10.0
libtpu: 0.0.40
codegen_flags: <defaults>
</compile_context>

<pallas_src>
import functools
import math

import jax
import jax.numpy as jnp
from jax.experimental import pallas as pl
from jax.experimental.pallas import tpu as pltpu

# ---------------- small BERT-style config ----------------
VOCAB = 128
HIDDEN = 32          # args.latent_size
NUM_HEADS = 4
HEAD_DIM = HIDDEN // NUM_HEADS
INTERMEDIATE = 64
NUM_LAYERS = 2
MAX_POS = 16
NUM_FEATURE = 4      # args.num_feature
LN_EPS = 1e-12
_GELU_C = math.sqrt(2.0 / math.pi)


# ---------------- fused encoder kernel ----------------
def _layernorm(v, g, b):
    mu = jnp.mean(v, axis=-1, keepdims=True)
    var = jnp.mean((v - mu) ** 2, axis=-1, keepdims=True)
    return (v - mu) * jax.lax.rsqrt(var + LN_EPS) * g + b


def _encoder_kernel(ids_ref, mask_ref, wemb_ref, pte_ref, eg_ref, eb_ref,
                    wqkv_ref, bqkv_ref, wo_ref, bo_ref, ln1g_ref, ln1b_ref,
                    w1_ref, b1_ref, w2_ref, b2_ref, ln2g_ref, ln2b_ref,
                    out_ref, *, batch, seq):
    R = batch * seq                                              # batch-folded rows

    # ---- embeddings: one-hot gather on the MXU keeps everything fused ----
    # ids arrive as (R, 1); the strided 64 B DMA happens once per forward.
    ids = ids_ref[...]                                           # (R, 1) int32
    vocab_iota = jax.lax.broadcasted_iota(jnp.int32, (R, VOCAB), 1)
    onehot = (vocab_iota == ids).astype(jnp.float32)             # (R, VOCAB)
    x = jnp.dot(onehot, wemb_ref[...], preferred_element_type=jnp.float32)
    x = x + pte_ref[...]                                         # + pos + token_type(=0)
    x = _layernorm(x, eg_ref[...], eb_ref[...])                  # (R, H)

    # block-diagonal additive mask, already score-shaped (R, R); hoisted once.
    add_mask = mask_ref[...]

    for l in range(NUM_LAYERS):
        wqkv_l = wqkv_ref[l]
        wo_l = wo_ref[l]
        # fused QKV projection; softmax scale is pre-folded into the Q slice.
        qkv = jnp.dot(x, wqkv_l, preferred_element_type=jnp.float32) + bqkv_ref[l]

        attn = None
        for h in range(NUM_HEADS):                               # static unroll, all VMEM
            q = qkv[:, h * HEAD_DIM:(h + 1) * HEAD_DIM]
            k = qkv[:, HIDDEN + h * HEAD_DIM:HIDDEN + (h + 1) * HEAD_DIM]
            v = qkv[:, 2 * HIDDEN + h * HEAD_DIM:2 * HIDDEN + (h + 1) * HEAD_DIM]
            s = jax.lax.dot_general(q, k, (((1,), (1,)), ((), ())),
                                    preferred_element_type=jnp.float32)     # q @ k^T
            s = s + add_mask
            s = s - jnp.max(s, axis=-1, keepdims=True)
            p = jnp.exp(s)
            p = p / jnp.sum(p, axis=-1, keepdims=True)           # exact softmax denom
            ctx_h = jnp.dot(p, v, preferred_element_type=jnp.float32)       # (R, HD)
            # accumulate straight through this head's slice of W_o (no concat)
            contrib = jnp.dot(ctx_h, wo_l[h * HEAD_DIM:(h + 1) * HEAD_DIM, :],
                              preferred_element_type=jnp.float32)
            attn = contrib if attn is None else attn + contrib
        attn = attn + bo_ref[l]
        x = _layernorm(attn + x, ln1g_ref[l], ln1b_ref[l])

        h1 = jnp.dot(x, w1_ref[l], preferred_element_type=jnp.float32) + b1_ref[l]
        # TODO(synk): HF BERT default is exact erf-GELU; tanh approximation used here.
        h1 = 0.5 * h1 * (1.0 + jnp.tanh(_GELU_C * (h1 + 0.044715 * h1 * h1 * h1)))
        h2 = jnp.dot(h1, w2_ref[l], preferred_element_type=jnp.float32) + b2_ref[l]
        x = _layernorm(h2 + x, ln2g_ref[l], ln2b_ref[l])

    # lane-dense store: first NUM_FEATURE rows of each batch packed to
    # (batch, NUM_FEATURE*HIDDEN) so the writeback is an unmasked full-lane vst.
    rows = []
    for b in range(batch):
        feats = [x[b * seq + f:b * seq + f + 1, :] for f in range(NUM_FEATURE)]
        rows.append(jnp.concatenate(feats, axis=1))              # (1, NUM_FEATURE*H)
    out_ref[...] = jnp.concatenate(rows, axis=0).astype(out_ref.dtype)


def _full_spec(shape):
    nd = len(shape)
    return pl.BlockSpec(shape, lambda i, _nd=nd: (0,) * _nd)


# ---------------- deterministic parameter init ----------------
def init_params(key):
    def normal(k, shape):
        return 0.02 * jax.random.normal(k, shape, dtype=jnp.float32)

    keys = jax.random.split(key, 3 + NUM_LAYERS)
    params = {
        "word_emb": normal(keys[0], (VOCAB, HIDDEN)),
        "pos_emb": normal(keys[1], (MAX_POS, HIDDEN)),
        "type_emb": normal(keys[2], (2, HIDDEN)),
        "emb_ln_g": jnp.ones((HIDDEN,), jnp.float32),
        "emb_ln_b": jnp.zeros((HIDDEN,), jnp.float32),
        "layers": [],
    }
    for l in range(NUM_LAYERS):
        lk = jax.random.split(keys[3 + l], 6)
        params["layers"].append({
            "wq": normal(lk[0], (HIDDEN, HIDDEN)), "bq": jnp.zeros((HIDDEN,), jnp.float32),
            "wk": normal(lk[1], (HIDDEN, HIDDEN)), "bk": jnp.zeros((HIDDEN,), jnp.float32),
            "wv": normal(lk[2], (HIDDEN, HIDDEN)), "bv": jnp.zeros((HIDDEN,), jnp.float32),
            "wo": normal(lk[3], (HIDDEN, HIDDEN)), "bo": jnp.zeros((HIDDEN,), jnp.float32),
            "ln1_g": jnp.ones((HIDDEN,), jnp.float32), "ln1_b": jnp.zeros((HIDDEN,), jnp.float32),
            "w1": normal(lk[4], (HIDDEN, INTERMEDIATE)), "b1": jnp.zeros((INTERMEDIATE,), jnp.float32),
            "w2": normal(lk[5], (INTERMEDIATE, HIDDEN)), "b2": jnp.zeros((HIDDEN,), jnp.float32),
            "ln2_g": jnp.ones((HIDDEN,), jnp.float32), "ln2_b": jnp.zeros((HIDDEN,), jnp.float32),
        })
    return params


# ---------------- BertEncoder.forward ----------------
def bert_encoder_forward(params, input_ids):
    B, S = input_ids.shape
    R = B * S
    L = NUM_LAYERS
    scale = 1.0 / math.sqrt(HEAD_DIM)

    # attention_mask = torch.ne(input_ids, 0) -> block-diagonal additive mask
    # over the batch-folded rows (HF-style -10000 on masked / cross-batch keys).
    valid = (input_ids != 0).reshape(R)                              # (R,)
    bidx = jnp.repeat(jnp.arange(B, dtype=jnp.int32), S)             # (R,)
    allowed = (bidx[:, None] == bidx[None, :]) & valid[None, :]
    add_mask = jnp.where(allowed, 0.0, -10000.0).astype(jnp.float32)  # (R, R)

    # positional + token-type(=0) embeddings, tiled over batch (hoisted once)
    pos_type = jnp.tile(params["pos_emb"][:S] + params["type_emb"][0][None, :], (B, 1))  # (R, H)

    # stack per-layer weights into [L, ...]; fuse Q|K|V along lanes and fold
    # the 1/sqrt(head_dim) softmax scale into the Q weight & bias.
    layers = params["layers"]
    wqkv = jnp.stack([jnp.concatenate([l["wq"] * scale, l["wk"], l["wv"]], axis=1) for l in layers])
    bqkv = jnp.stack([jnp.concatenate([l["bq"] * scale, l["bk"], l["bv"]])[None, :] for l in layers])
    wo = jnp.stack([l["wo"] for l in layers])
    bo = jnp.stack([l["bo"][None, :] for l in layers])
    ln1g = jnp.stack([l["ln1_g"][None, :] for l in layers])
    ln1b = jnp.stack([l["ln1_b"][None, :] for l in layers])
    w1 = jnp.stack([l["w1"] for l in layers])
    b1 = jnp.stack([l["b1"][None, :] for l in layers])
    w2 = jnp.stack([l["w2"] for l in layers])
    b2 = jnp.stack([l["b2"][None, :] for l in layers])
    ln2g = jnp.stack([l["ln2_g"][None, :] for l in layers])
    ln2b = jnp.stack([l["ln2_b"][None, :] for l in layers])

    ids = input_ids.reshape(R, 1).astype(jnp.int32)

    in_specs = [
        _full_spec((R, 1)),                              # token ids (batch folded)
        _full_spec((R, R)),                              # block-diag additive mask
        _full_spec((VOCAB, HIDDEN)),                     # word embedding table
        _full_spec((R, HIDDEN)),                         # pos + type embedding (tiled)
        _full_spec((1, HIDDEN)),                         # emb LN gamma
        _full_spec((1, HIDDEN)),                         # emb LN beta
        _full_spec((L, HIDDEN, 3 * HIDDEN)),             # fused QKV weights (Q pre-scaled)
        _full_spec((L, 1, 3 * HIDDEN)),                  # fused QKV bias (Q pre-scaled)
        _full_spec((L, HIDDEN, HIDDEN)),                 # attention output weight
        _full_spec((L, 1, HIDDEN)),                      # attention output bias
        _full_spec((L, 1, HIDDEN)),                      # LN1 gamma
        _full_spec((L, 1, HIDDEN)),                      # LN1 beta
        _full_spec((L, HIDDEN, INTERMEDIATE)),           # MLP w1
        _full_spec((L, 1, INTERMEDIATE)),                # MLP b1
        _full_spec((L, INTERMEDIATE, HIDDEN)),           # MLP w2
        _full_spec((L, 1, HIDDEN)),                      # MLP b2
        _full_spec((L, 1, HIDDEN)),                      # LN2 gamma
        _full_spec((L, 1, HIDDEN)),                      # LN2 beta
    ]

    # Single grid step: whole (tiny) problem runs in one invocation — the grid
    # over batch was pure per-step overhead on single-TC chips, and per-batch
    # work is far too small for v7x cross-TC sharding to pay off.
    packed = pl.pallas_call(
        functools.partial(_encoder_kernel, batch=B, seq=S),
        grid=(1,),
        in_specs=in_specs,
        out_specs=_full_spec((B, NUM_FEATURE * HIDDEN)),
        out_shape=jax.ShapeDtypeStruct((B, NUM_FEATURE * HIDDEN), jnp.float32),
        compiler_params=pltpu.CompilerParams(dimension_semantics=("arbitrary",)),
    )(ids, add_mask, params["word_emb"], pos_type,
      params["emb_ln_g"].reshape(1, HIDDEN), params["emb_ln_b"].reshape(1, HIDDEN),
      wqkv, bqkv, wo, bo, ln1g, ln1b, w1, b1, w2, b2, ln2g, ln2b)

    hidden_state = packed.reshape(B, NUM_FEATURE, HIDDEN)
    return hidden_state.transpose(0, 2, 1)   # == .permute(0, 2, 1) -> (B, H, num_feature)


if __name__ == "__main__":
    key = jax.random.PRNGKey(0)
    pkey, ikey = jax.random.split(key)
    params = init_params(pkey)

    B, S = 2, 8
    input_ids = jax.random.randint(ikey, (B, S), 1, VOCAB, dtype=jnp.int32)
    input_ids = input_ids.at[1, -2:].set(0)   # padding tokens -> exercised by the mask

    out = jax.jit(functools.partial(bert_encoder_forward, params))(input_ids)
    jax.block_until_ready(out)
    assert out.shape == (B, HIDDEN, NUM_FEATURE), out.shape
    assert out.dtype == jnp.float32
    print("KERNEL_OK")
</pallas_src>

<mosaic_0001>
module attributes {stable_mosaic.version = 11 : i64} {
  func.func @_encoder_kernel(%arg0: i32, %arg1: memref<16x1xi32, #tpu.memory_space<vmem>>, %arg2: memref<16x16xf32, #tpu.memory_space<vmem>>, %arg3: memref<128x32xf32, #tpu.memory_space<vmem>>, %arg4: memref<16x32xf32, #tpu.memory_space<vmem>>, %arg5: memref<1x32xf32, #tpu.memory_space<vmem>>, %arg6: memref<1x32xf32, #tpu.memory_space<vmem>>, %arg7: memref<2x32x96xf32, #tpu.memory_space<vmem>>, %arg8: memref<2x1x96xf32, #tpu.memory_space<vmem>>, %arg9: memref<2x32x32xf32, #tpu.memory_space<vmem>>, %arg10: memref<2x1x32xf32, #tpu.memory_space<vmem>>, %arg11: memref<2x1x32xf32, #tpu.memory_space<vmem>>, %arg12: memref<2x1x32xf32, #tpu.memory_space<vmem>>, %arg13: memref<2x32x64xf32, #tpu.memory_space<vmem>>, %arg14: memref<2x1x64xf32, #tpu.memory_space<vmem>>, %arg15: memref<2x64x32xf32, #tpu.memory_space<vmem>>, %arg16: memref<2x1x32xf32, #tpu.memory_space<vmem>>, %arg17: memref<2x1x32xf32, #tpu.memory_space<vmem>>, %arg18: memref<2x1x32xf32, #tpu.memory_space<vmem>>, %arg19: memref<2x128xf32, #tpu.memory_space<vmem>>) attributes {dimension_semantics = [#tpu.dimension_semantics<arbitrary>], iteration_bounds = array<i64: 1>, scalar_prefetch = 0 : i64, scratch_operands = 0 : i64, tpu.core_type = #tpu.core_type<tc>, window_params = [{pipeline_mode = #tpu.pipeline_mode<synchronous>, transform_indices = @transform_0, window_bounds = array<i64: 16, 1>}, {pipeline_mode = #tpu.pipeline_mode<synchronous>, transform_indices = @transform_1, window_bounds = array<i64: 16, 16>}, {pipeline_mode = #tpu.pipeline_mode<synchronous>, transform_indices = @transform_2, window_bounds = array<i64: 128, 32>}, {pipeline_mode = #tpu.pipeline_mode<synchronous>, transform_indices = @transform_3, window_bounds = array<i64: 16, 32>}, {pipeline_mode = #tpu.pipeline_mode<synchronous>, transform_indices = @transform_4, window_bounds = array<i64: 1, 32>}, {pipeline_mode = #tpu.pipeline_mode<synchronous>, transform_indices = @transform_5, window_bounds = array<i64: 1, 32>}, {pipeline_mode = #tpu.pipeline_mode<synchronous>, transform_indices = @transform_6, window_bounds = array<i64: 2, 32, 96>}, {pipeline_mode = #tpu.pipeline_mode<synchronous>, transform_indices = @transform_7, window_bounds = array<i64: 2, 1, 96>}, {pipeline_mode = #tpu.pipeline_mode<synchronous>, transform_indices = @transform_8, window_bounds = array<i64: 2, 32, 32>}, {pipeline_mode = #tpu.pipeline_mode<synchronous>, transform_indices = @transform_9, window_bounds = array<i64: 2, 1, 32>}, {pipeline_mode = #tpu.pipeline_mode<synchronous>, transform_indices = @transform_10, window_bounds = array<i64: 2, 1, 32>}, {pipeline_mode = #tpu.pipeline_mode<synchronous>, transform_indices = @transform_11, window_bounds = array<i64: 2, 1, 32>}, {pipeline_mode = #tpu.pipeline_mode<synchronous>, transform_indices = @transform_12, window_bounds = array<i64: 2, 32, 64>}, {pipeline_mode = #tpu.pipeline_mode<synchronous>, transform_indices = @transform_13, window_bounds = array<i64: 2, 1, 64>}, {pipeline_mode = #tpu.pipeline_mode<synchronous>, transform_indices = @transform_14, window_bounds = array<i64: 2, 64, 32>}, {pipeline_mode = #tpu.pipeline_mode<synchronous>, transform_indices = @transform_15, window_bounds = array<i64: 2, 1, 32>}, {pipeline_mode = #tpu.pipeline_mode<synchronous>, transform_indices = @transform_16, window_bounds = array<i64: 2, 1, 32>}, {pipeline_mode = #tpu.pipeline_mode<synchronous>, transform_indices = @transform_17, window_bounds = array<i64: 2, 1, 32>}, {pipeline_mode = #tpu.pipeline_mode<synchronous>, transform_indices = @transform_18, window_bounds = array<i64: 2, 128>}]} {
    %c0 = arith.constant 0 : index
    %c0_0 = arith.constant 0 : index
    %0 = vector.load %arg1[%c0, %c0_0] : memref<16x1xi32, #tpu.memory_space<vmem>>, vector<16x1xi32>
    %1 = tpu.iota {dimensions = array<i32: 1>} : vector<16x128xi32>
    %2 = vector.broadcast %0 : vector<16x1xi32> to vector<16x128xi32>
    %3 = arith.cmpi eq, %1, %2 : vector<16x128xi32>
    %4 = arith.extui %3 : vector<16x128xi1> to vector<16x128xi32>
    %5 = arith.sitofp %4 : vector<16x128xi32> to vector<16x128xf32>
    %c0_1 = arith.constant 0 : index
    %c0_2 = arith.constant 0 : index
    %6 = vector.load %arg3[%c0_1, %c0_2] : memref<128x32xf32, #tpu.memory_space<vmem>>, vector<128x32xf32>
    %cst = arith.constant dense<0.000000e+00> : vector<16x32xf32>
    %7 = tpu.matmul %5, %6, %cst {dimension_numbers = #tpu.dot_dimension_numbers<[1], [0], [0], [1], [0, 0, 1, 1], [], []>} : vector<16x128xf32>, vector<128x32xf32>, vector<16x32xf32> -> vector<16x32xf32>
    %c0_3 = arith.constant 0 : index
    %c0_4 = arith.constant 0 : index
    %8 = vector.load %arg4[%c0_3, %c0_4] : memref<16x32xf32, #tpu.memory_space<vmem>>, vector<16x32xf32>
    %9 = arith.addf %7, %8 : vector<16x32xf32>
    %c0_5 = arith.constant 0 : index
    %c0_6 = arith.constant 0 : index
    %10 = vector.load %arg5[%c0_5, %c0_6] : memref<1x32xf32, #tpu.memory_space<vmem>>, vector<1x32xf32>
    %c0_7 = arith.constant 0 : index
    %c0_8 = arith.constant 0 : index
    %11 = vector.load %arg6[%c0_7, %c0_8] : memref<1x32xf32, #tpu.memory_space<vmem>>, vector<1x32xf32>
    %cst_9 = arith.constant dense<0.000000e+00> : vector<16xf32>
    %12 = vector.multi_reduction <add>, %9, %cst_9 [1] : vector<16x32xf32> to vector<16xf32>
    %13 = vector.shape_cast %12 : vector<16xf32> to vector<16x1xf32>
    %cst_10 = arith.constant 3.200000e+01 : f32
    %14 = vector.broadcast %cst_10 : f32 to vector<16x1xf32>
    %15 = arith.divf %13, %14 : vector<16x1xf32>
    %16 = vector.broadcast %15 : vector<16x1xf32> to vector<16x32xf32>
    %17 = arith.subf %9, %16 : vector<16x32xf32>
    %18 = arith.mulf %17, %17 : vector<16x32xf32>
    %cst_11 = arith.constant dense<0.000000e+00> : vector<16xf32>
    %19 = vector.multi_reduction <add>, %18, %cst_11 [1] : vector<16x32xf32> to vector<16xf32>
    %20 = vector.shape_cast %19 : vector<16xf32> to vector<16x1xf32>
    %cst_12 = arith.constant 3.200000e+01 : f32
    %21 = vector.broadcast %cst_12 : f32 to vector<16x1xf32>
    %22 = arith.divf %20, %21 : vector<16x1xf32>
    %23 = vector.broadcast %15 : vector<16x1xf32> to vector<16x32xf32>
    %24 = arith.subf %9, %23 : vector<16x32xf32>
    %cst_13 = arith.constant 9.99999996E-13 : f32
    %25 = vector.broadcast %cst_13 : f32 to vector<16x1xf32>
    %26 = arith.addf %22, %25 : vector<16x1xf32>
    %27 = math.rsqrt %26 : vector<16x1xf32>
    %28 = vector.broadcast %27 : vector<16x1xf32> to vector<16x32xf32>
    %29 = arith.mulf %24, %28 : vector<16x32xf32>
    %30 = vector.broadcast %10 : vector<1x32xf32> to vector<16x32xf32>
    %31 = arith.mulf %29, %30 : vector<16x32xf32>
    %32 = vector.broadcast %11 : vector<1x32xf32> to vector<16x32xf32>
    %33 = arith.addf %31, %32 : vector<16x32xf32>
    %c0_14 = arith.constant 0 : index
    %c0_15 = arith.constant 0 : index
    %34 = vector.load %arg2[%c0_14, %c0_15] : memref<16x16xf32, #tpu.memory_space<vmem>>, vector<16x16xf32>
    %c0_16 = arith.constant 0 : index
    %c0_17 = arith.constant 0 : index
    %c0_18 = arith.constant 0 : index
    %35 = vector.load %arg7[%c0_16, %c0_17, %c0_18] : memref<2x32x96xf32, #tpu.memory_space<vmem>>, vector<1x32x96xf32>
    %36 = vector.shape_cast %35 : vector<1x32x96xf32> to vector<32x96xf32>
    %c0_19 = arith.constant 0 : index
    %c0_20 = arith.constant 0 : index
    %c0_21 = arith.constant 0 : index
    %37 = vector.load %arg9[%c0_19, %c0_20, %c0_21] : memref<2x32x32xf32, #tpu.memory_space<vmem>>, vector<1x32x32xf32>
    %38 = vector.shape_cast %37 : vector<1x32x32xf32> to vector<32x32xf32>
    %cst_22 = arith.constant dense<0.000000e+00> : vector<16x96xf32>
    %39 = tpu.matmul %33, %36, %cst_22 {dimension_numbers = #tpu.dot_dimension_numbers<[1], [0], [0], [1], [0, 0, 1, 1], [], []>} : vector<16x32xf32>, vector<32x96xf32>, vector<16x96xf32> -> vector<16x96xf32>
    %c0_23 = arith.constant 0 : index
    %c0_24 = arith.constant 0 : index
    %c0_25 = arith.constant 0 : index
    %40 = vector.load %arg8[%c0_23, %c0_24, %c0_25] : memref<2x1x96xf32, #tpu.memory_space<vmem>>, vector<1x1x96xf32>
    %41 = vector.shape_cast %40 : vector<1x1x96xf32> to vector<1x96xf32>
    %42 = vector.broadcast %41 : vector<1x96xf32> to vector<16x96xf32>
    %43 = arith.addf %39, %42 : vector<16x96xf32>
    %44 = vector.extract_strided_slice %43 {offsets = [0, 0], sizes = [16, 8], strides = [1, 1]} : vector<16x96xf32> to vector<16x8xf32>
    %45 = vector.extract_strided_slice %43 {offsets = [0, 32], sizes = [16, 8], strides = [1, 1]} : vector<16x96xf32> to vector<16x8xf32>
    %46 = vector.extract_strided_slice %43 {offsets = [0, 64], sizes = [16, 8], strides = [1, 1]} : vector<16x96xf32> to vector<16x8xf32>
    %cst_26 = arith.constant dense<0.000000e+00> : vector<16x16xf32>
    %47 = tpu.matmul %44, %45, %cst_26 {dimension_numbers = #tpu.dot_dimension_numbers<[1], [1], [0], [0], [0, 0, 1, 0], [], []>} : vector<16x8xf32>, vector<16x8xf32>, vector<16x16xf32> -> vector<16x16xf32>
    %48 = arith.addf %47, %34 : vector<16x16xf32>
    %cst_27 = arith.constant dense<0xFF800000> : vector<16xf32>
    %49 = vector.multi_reduction <maximumf>, %48, %cst_27 [1] : vector<16x16xf32> to vector<16xf32>
    %50 = vector.shape_cast %49 : vector<16xf32> to vector<16x1xf32>
    %51 = vector.broadcast %50 : vector<16x1xf32> to vector<16x16xf32>
    %52 = arith.subf %48, %51 : vector<16x16xf32>
    %53 = math.exp %52 : vector<16x16xf32>
    %cst_28 = arith.constant dense<0.000000e+00> : vector<16xf32>
    %54 = vector.multi_reduction <add>, %53, %cst_28 [1] : vector<16x16xf32> to vector<16xf32>
    %55 = vector.shape_cast %54 : vector<16xf32> to vector<16x1xf32>
    %56 = vector.broadcast %55 : vector<16x1xf32> to vector<16x16xf32>
    %57 = arith.divf %53, %56 : vector<16x16xf32>
    %cst_29 = arith.constant dense<0.000000e+00> : vector<16x8xf32>
    %58 = tpu.matmul %57, %46, %cst_29 {dimension_numbers = #tpu.dot_dimension_numbers<[1], [0], [0], [1], [0, 0, 1, 1], [], []>} : vector<16x16xf32>, vector<16x8xf32>, vector<16x8xf32> -> vector<16x8xf32>
    %59 = vector.extract_strided_slice %38 {offsets = [0, 0], sizes = [8, 32], strides = [1, 1]} : vector<32x32xf32> to vector<8x32xf32>
    %cst_30 = arith.constant dense<0.000000e+00> : vector<16x32xf32>
    %60 = tpu.matmul %58, %59, %cst_30 {dimension_numbers = #tpu.dot_dimension_numbers<[1], [0], [0], [1], [0, 0, 1, 1], [], []>} : vector<16x8xf32>, vector<8x32xf32>, vector<16x32xf32> -> vector<16x32xf32>
    %61 = vector.extract_strided_slice %43 {offsets = [0, 8], sizes = [16, 8], strides = [1, 1]} : vector<16x96xf32> to vector<16x8xf32>
    %62 = vector.extract_strided_slice %43 {offsets = [0, 40], sizes = [16, 8], strides = [1, 1]} : vector<16x96xf32> to vector<16x8xf32>
    %63 = vector.extract_strided_slice %43 {offsets = [0, 72], sizes = [16, 8], strides = [1, 1]} : vector<16x96xf32> to vector<16x8xf32>
    %cst_31 = arith.constant dense<0.000000e+00> : vector<16x16xf32>
    %64 = tpu.matmul %61, %62, %cst_31 {dimension_numbers = #tpu.dot_dimension_numbers<[1], [1], [0], [0], [0, 0, 1, 0], [], []>} : vector<16x8xf32>, vector<16x8xf32>, vector<16x16xf32> -> vector<16x16xf32>
    %65 = arith.addf %64, %34 : vector<16x16xf32>
    %cst_32 = arith.constant dense<0xFF800000> : vector<16xf32>
    %66 = vector.multi_reduction <maximumf>, %65, %cst_32 [1] : vector<16x16xf32> to vector<16xf32>
    %67 = vector.shape_cast %66 : vector<16xf32> to vector<16x1xf32>
    %68 = vector.broadcast %67 : vector<16x1xf32> to vector<16x16xf32>
    %69 = arith.subf %65, %68 : vector<16x16xf32>
    %70 = math.exp %69 : vector<16x16xf32>
    %cst_33 = arith.constant dense<0.000000e+00> : vector<16xf32>
    %71 = vector.multi_reduction <add>, %70, %cst_33 [1] : vector<16x16xf32> to vector<16xf32>
    %72 = vector.shape_cast %71 : vector<16xf32> to vector<16x1xf32>
    %73 = vector.broadcast %72 : vector<16x1xf32> to vector<16x16xf32>
    %74 = arith.divf %70, %73 : vector<16x16xf32>
    %cst_34 = arith.constant dense<0.000000e+00> : vector<16x8xf32>
    %75 = tpu.matmul %74, %63, %cst_34 {dimension_numbers = #tpu.dot_dimension_numbers<[1], [0], [0], [1], [0, 0, 1, 1], [], []>} : vector<16x16xf32>, vector<16x8xf32>, vector<16x8xf32> -> vector<16x8xf32>
    %76 = vector.extract_strided_slice %38 {offsets = [8, 0], sizes = [8, 32], strides = [1, 1]} : vector<32x32xf32> to vector<8x32xf32>
    %cst_35 = arith.constant dense<0.000000e+00> : vector<16x32xf32>
    %77 = tpu.matmul %75, %76, %cst_35 {dimension_numbers = #tpu.dot_dimension_numbers<[1], [0], [0], [1], [0, 0, 1, 1], [], []>} : vector<16x8xf32>, vector<8x32xf32>, vector<16x32xf32> -> vector<16x32xf32>
    %78 = arith.addf %60, %77 : vector<16x32xf32>
    %79 = vector.extract_strided_slice %43 {offsets = [0, 16], sizes = [16, 8], strides = [1, 1]} : vector<16x96xf32> to vector<16x8xf32>
    %80 = vector.extract_strided_slice %43 {offsets = [0, 48], sizes = [16, 8], strides = [1, 1]} : vector<16x96xf32> to vector<16x8xf32>
    %81 = vector.extract_strided_slice %43 {offsets = [0, 80], sizes = [16, 8], strides = [1, 1]} : vector<16x96xf32> to vector<16x8xf32>
    %cst_36 = arith.constant dense<0.000000e+00> : vector<16x16xf32>
    %82 = tpu.matmul %79, %80, %cst_36 {dimension_numbers = #tpu.dot_dimension_numbers<[1], [1], [0], [0], [0, 0, 1, 0], [], []>} : vector<16x8xf32>, vector<16x8xf32>, vector<16x16xf32> -> vector<16x16xf32>
    %83 = arith.addf %82, %34 : vector<16x16xf32>
    %cst_37 = arith.constant dense<0xFF800000> : vector<16xf32>
    %84 = vector.multi_reduction <maximumf>, %83, %cst_37 [1] : vector<16x16xf32> to vector<16xf32>
    %85 = vector.shape_cast %84 : vector<16xf32> to vector<16x1xf32>
    %86 = vector.broadcast %85 : vector<16x1xf32> to vector<16x16xf32>
    %87 = arith.subf %83, %86 : vector<16x16xf32>
    %88 = math.exp %87 : vector<16x16xf32>
    %cst_38 = arith.constant dense<0.000000e+00> : vector<16xf32>
    %89 = vector.multi_reduction <add>, %88, %cst_38 [1] : vector<16x16xf32> to vector<16xf32>
    %90 = vector.shape_cast %89 : vector<16xf32> to vector<16x1xf32>
    %91 = vector.broadcast %90 : vector<16x1xf32> to vector<16x16xf32>
    %92 = arith.divf %88, %91 : vector<16x16xf32>
    %cst_39 = arith.constant dense<0.000000e+00> : vector<16x8xf32>
    %93 = tpu.matmul %92, %81, %cst_39 {dimension_numbers = #tpu.dot_dimension_numbers<[1], [0], [0], [1], [0, 0, 1, 1], [], []>} : vector<16x16xf32>, vector<16x8xf32>, vector<16x8xf32> -> vector<16x8xf32>
    %94 = vector.extract_strided_slice %38 {offsets = [16, 0], sizes = [8, 32], strides = [1, 1]} : vector<32x32xf32> to vector<8x32xf32>
    %cst_40 = arith.constant dense<0.000000e+00> : vector<16x32xf32>
    %95 = tpu.matmul %93, %94, %cst_40 {dimension_numbers = #tpu.dot_dimension_numbers<[1], [0], [0], [1], [0, 0, 1, 1], [], []>} : vector<16x8xf32>, vector<8x32xf32>, vector<16x32xf32> -> vector<16x32xf32>
    %96 = arith.addf %78, %95 : vector<16x32xf32>
    %97 = vector.extract_strided_slice %43 {offsets = [0, 24], sizes = [16, 8], strides = [1, 1]} : vector<16x96xf32> to vector<16x8xf32>
    %98 = vector.extract_strided_slice %43 {offsets = [0, 56], sizes = [16, 8], strides = [1, 1]} : vector<16x96xf32> to vector<16x8xf32>
    %99 = vector.extract_strided_slice %43 {offsets = [0, 88], sizes = [16, 8], strides = [1, 1]} : vector<16x96xf32> to vector<16x8xf32>
    %cst_41 = arith.constant dense<0.000000e+00> : vector<16x16xf32>
    %100 = tpu.matmul %97, %98, %cst_41 {dimension_numbers = #tpu.dot_dimension_numbers<[1], [1], [0], [0], [0, 0, 1, 0], [], []>} : vector<16x8xf32>, vector<16x8xf32>, vector<16x16xf32> -> vector<16x16xf32>
    %101 = arith.addf %100, %34 : vector<16x16xf32>
    %cst_42 = arith.constant dense<0xFF800000> : vector<16xf32>
    %102 = vector.multi_reduction <maximumf>, %101, %cst_42 [1] : vector<16x16xf32> to vector<16xf32>
    %103 = vector.shape_cast %102 : vector<16xf32> to vector<16x1xf32>
    %104 = vector.broadcast %103 : vector<16x1xf32> to vector<16x16xf32>
    %105 = arith.subf %101, %104 : vector<16x16xf32>
    %106 = math.exp %105 : vector<16x16xf32>
    %cst_43 = arith.constant dense<0.000000e+00> : vector<16xf32>
    %107 = vector.multi_reduction <add>, %106, %cst_43 [1] : vector<16x16xf32> to vector<16xf32>
    %108 = vector.shape_cast %107 : vector<16xf32> to vector<16x1xf32>
    %109 = vector.broadcast %108 : vector<16x1xf32> to vector<16x16xf32>
    %110 = arith.divf %106, %109 : vector<16x16xf32>
    %cst_44 = arith.constant dense<0.000000e+00> : vector<16x8xf32>
    %111 = tpu.matmul %110, %99, %cst_44 {dimension_numbers = #tpu.dot_dimension_numbers<[1], [0], [0], [1], [0, 0, 1, 1], [], []>} : vector<16x16xf32>, vector<16x8xf32>, vector<16x8xf32> -> vector<16x8xf32>
    %112 = vector.extract_strided_slice %38 {offsets = [24, 0], sizes = [8, 32], strides = [1, 1]} : vector<32x32xf32> to vector<8x32xf32>
    %cst_45 = arith.constant dense<0.000000e+00> : vector<16x32xf32>
    %113 = tpu.matmul %111, %112, %cst_45 {dimension_numbers = #tpu.dot_dimension_numbers<[1], [0], [0], [1], [0, 0, 1, 1], [], []>} : vector<16x8xf32>, vector<8x32xf32>, vector<16x32xf32> -> vector<16x32xf32>
    %114 = arith.addf %96, %113 : vector<16x32xf32>
    %c0_46 = arith.constant 0 : index
    %c0_47 = arith.constant 0 : index
    %c0_48 = arith.constant 0 : index
    %115 = vector.load %arg10[%c0_46, %c0_47, %c0_48] : memref<2x1x32xf32, #tpu.memory_space<vmem>>, vector<1x1x32xf32>
    %116 = vector.shape_cast %115 : vector<1x1x32xf32> to vector<1x32xf32>
    %117 = vector.broadcast %116 : vector<1x32xf32> to vector<16x32xf32>
    %118 = arith.addf %114, %117 : vector<16x32xf32>
    %119 = arith.addf %118, %33 : vector<16x32xf32>
    %c0_49 = arith.constant 0 : index
    %c0_50 = arith.constant 0 : index
    %c0_51 = arith.constant 0 : index
    %120 = vector.load %arg11[%c0_49, %c0_50, %c0_51] : memref<2x1x32xf32, #tpu.memory_space<vmem>>, vector<1x1x32xf32>
    %121 = vector.shape_cast %120 : vector<1x1x32xf32> to vector<1x32xf32>
    %c0_52 = arith.constant 0 : index
    %c0_53 = arith.constant 0 : index
    %c0_54 = arith.constant 0 : index
    %122 = vector.load %arg12[%c0_52, %c0_53, %c0_54] : memref<2x1x32xf32, #tpu.memory_space<vmem>>, vector<1x1x32xf32>
    %123 = vector.shape_cast %122 : vector<1x1x32xf32> to vector<1x32xf32>
    %cst_55 = arith.constant dense<0.000000e+00> : vector<16xf32>
    %124 = vector.multi_reduction <add>, %119, %cst_55 [1] : vector<16x32xf32> to vector<16xf32>
    %125 = vector.shape_cast %124 : vector<16xf32> to vector<16x1xf32>
    %cst_56 = arith.constant 3.200000e+01 : f32
    %126 = vector.broadcast %cst_56 : f32 to vector<16x1xf32>
    %127 = arith.divf %125, %126 : vector<16x1xf32>
    %128 = vector.broadcast %127 : vector<16x1xf32> to vector<16x32xf32>
    %129 = arith.subf %119, %128 : vector<16x32xf32>
    %130 = arith.mulf %129, %129 : vector<16x32xf32>
    %cst_57 = arith.constant dense<0.000000e+00> : vector<16xf32>
    %131 = vector.multi_reduction <add>, %130, %cst_57 [1] : vector<16x32xf32> to vector<16xf32>
    %132 = vector.shape_cast %131 : vector<16xf32> to vector<16x1xf32>
    %cst_58 = arith.constant 3.200000e+01 : f32
    %133 = vector.broadcast %cst_58 : f32 to vector<16x1xf32>
    %134 = arith.divf %132, %133 : vector<16x1xf32>
    %135 = vector.broadcast %127 : vector<16x1xf32> to vector<16x32xf32>
    %136 = arith.subf %119, %135 : vector<16x32xf32>
    %cst_59 = arith.constant 9.99999996E-13 : f32
    %137 = vector.broadcast %cst_59 : f32 to vector<16x1xf32>
    %138 = arith.addf %134, %137 : vector<16x1xf32>
    %139 = math.rsqrt %138 : vector<16x1xf32>
    %140 = vector.broadcast %139 : vector<16x1xf32> to vector<16x32xf32>
    %141 = arith.mulf %136, %140 : vector<16x32xf32>
    %142 = vector.broadcast %121 : vector<1x32xf32> to vector<16x32xf32>
    %143 = arith.mulf %141, %142 : vector<16x32xf32>
    %144 = vector.broadcast %123 : vector<1x32xf32> to vector<16x32xf32>
    %145 = arith.addf %143, %144 : vector<16x32xf32>
    %c0_60 = arith.constant 0 : index
    %c0_61 = arith.constant 0 : index
    %c0_62 = arith.constant 0 : index
    %146 = vector.load %arg13[%c0_60, %c0_61, %c0_62] : memref<2x32x64xf32, #tpu.memory_space<vmem>>, vector<1x32x64xf32>
    %147 = vector.shape_cast %146 : vector<1x32x64xf32> to vector<32x64xf32>
    %cst_63 = arith.constant dense<0.000000e+00> : vector<16x64xf32>
    %148 = tpu.matmul %145, %147, %cst_63 {dimension_numbers = #tpu.dot_dimension_numbers<[1], [0], [0], [1], [0, 0, 1, 1], [], []>} : vector<16x32xf32>, vector<32x64xf32>, vector<16x64xf32> -> vector<16x64xf32>
    %c0_64 = arith.constant 0 : index
    %c0_65 = arith.constant 0 : index
    %c0_66 = arith.constant 0 : index
    %149 = vector.load %arg14[%c0_64, %c0_65, %c0_66] : memref<2x1x64xf32, #tpu.memory_space<vmem>>, vector<1x1x64xf32>
    %150 = vector.shape_cast %149 : vector<1x1x64xf32> to vector<1x64xf32>
    %151 = vector.broadcast %150 : vector<1x64xf32> to vector<16x64xf32>
    %152 = arith.addf %148, %151 : vector<16x64xf32>
    %cst_67 = arith.constant 5.000000e-01 : f32
    %153 = vector.broadcast %cst_67 : f32 to vector<16x64xf32>
    %154 = arith.mulf %153, %152 : vector<16x64xf32>
    %cst_68 = arith.constant 4.471500e-02 : f32
    %155 = vector.broadcast %cst_68 : f32 to vector<16x64xf32>
    %156 = arith.mulf %155, %152 : vector<16x64xf32>
    %157 = arith.mulf %156, %152 : vector<16x64xf32>
    %158 = arith.mulf %157, %152 : vector<16x64xf32>
    %159 = arith.addf %152, %158 : vector<16x64xf32>
    %cst_69 = arith.constant 0.797884583 : f32
    %160 = vector.broadcast %cst_69 : f32 to vector<16x64xf32>
    %161 = arith.mulf %160, %159 : vector<16x64xf32>
    %162 = math.tanh %161 : vector<16x64xf32>
    %cst_70 = arith.constant 1.000000e+00 : f32
    %163 = vector.broadcast %cst_70 : f32 to vector<16x64xf32>
    %164 = arith.addf %163, %162 : vector<16x64xf32>
    %165 = arith.mulf %154, %164 : vector<16x64xf32>
    %c0_71 = arith.constant 0 : index
    %c0_72 = arith.constant 0 : index
    %c0_73 = arith.constant 0 : index
    %166 = vector.load %arg15[%c0_71, %c0_72, %c0_73] : memref<2x64x32xf32, #tpu.memory_space<vmem>>, vector<1x64x32xf32>
    %167 = vector.shape_cast %166 : vector<1x64x32xf32> to vector<64x32xf32>
    %cst_74 = arith.constant dense<0.000000e+00> : vector<16x32xf32>
    %168 = tpu.matmul %165, %167, %cst_74 {dimension_numbers = #tpu.dot_dimension_numbers<[1], [0], [0], [1], [0, 0, 1, 1], [], []>} : vector<16x64xf32>, vector<64x32xf32>, vector<16x32xf32> -> vector<16x32xf32>
    %c0_75 = arith.constant 0 : index
    %c0_76 = arith.constant 0 : index
    %c0_77 = arith.constant 0 : index
    %169 = vector.load %arg16[%c0_75, %c0_76, %c0_77] : memref<2x1x32xf32, #tpu.memory_space<vmem>>, vector<1x1x32xf32>
    %170 = vector.shape_cast %169 : vector<1x1x32xf32> to vector<1x32xf32>
    %171 = vector.broadcast %170 : vector<1x32xf32> to vector<16x32xf32>
    %172 = arith.addf %168, %171 : vector<16x32xf32>
    %173 = arith.addf %172, %145 : vector<16x32xf32>
    %c0_78 = arith.constant 0 : index
    %c0_79 = arith.constant 0 : index
    %c0_80 = arith.constant 0 : index
    %174 = vector.load %arg17[%c0_78, %c0_79, %c0_80] : memref<2x1x32xf32, #tpu.memory_space<vmem>>, vector<1x1x32xf32>
    %175 = vector.shape_cast %174 : vector<1x1x32xf32> to vector<1x32xf32>
    %c0_81 = arith.constant 0 : index
    %c0_82 = arith.constant 0 : index
    %c0_83 = arith.constant 0 : index
    %176 = vector.load %arg18[%c0_81, %c0_82, %c0_83] : memref<2x1x32xf32, #tpu.memory_space<vmem>>, vector<1x1x32xf32>
    %177 = vector.shape_cast %176 : vector<1x1x32xf32> to vector<1x32xf32>
    %cst_84 = arith.constant dense<0.000000e+00> : vector<16xf32>
    %178 = vector.multi_reduction <add>, %173, %cst_84 [1] : vector<16x32xf32> to vector<16xf32>
    %179 = vector.shape_cast %178 : vector<16xf32> to vector<16x1xf32>
    %cst_85 = arith.constant 3.200000e+01 : f32
    %180 = vector.broadcast %cst_85 : f32 to vector<16x1xf32>
    %181 = arith.divf %179, %180 : vector<16x1xf32>
    %182 = vector.broadcast %181 : vector<16x1xf32> to vector<16x32xf32>
    %183 = arith.subf %173, %182 : vector<16x32xf32>
    %184 = arith.mulf %183, %183 : vector<16x32xf32>
    %cst_86 = arith.constant dense<0.000000e+00> : vector<16xf32>
    %185 = vector.multi_reduction <add>, %184, %cst_86 [1] : vector<16x32xf32> to vector<16xf32>
    %186 = vector.shape_cast %185 : vector<16xf32> to vector<16x1xf32>
    %cst_87 = arith.constant 3.200000e+01 : f32
    %187 = vector.broadcast %cst_87 : f32 to vector<16x1xf32>
    %188 = arith.divf %186, %187 : vector<16x1xf32>
    %189 = vector.broadcast %181 : vector<16x1xf32> to vector<16x32xf32>
    %190 = arith.subf %173, %189 : vector<16x32xf32>
    %cst_88 = arith.constant 9.99999996E-13 : f32
    %191 = vector.broadcast %cst_88 : f32 to vector<16x1xf32>
    %192 = arith.addf %188, %191 : vector<16x1xf32>
    %193 = math.rsqrt %192 : vector<16x1xf32>
    %194 = vector.broadcast %193 : vector<16x1xf32> to vector<16x32xf32>
    %195 = arith.mulf %190, %194 : vector<16x32xf32>
    %196 = vector.broadcast %175 : vector<1x32xf32> to vector<16x32xf32>
    %197 = arith.mulf %195, %196 : vector<16x32xf32>
    %198 = vector.broadcast %177 : vector<1x32xf32> to vector<16x32xf32>
    %199 = arith.addf %197, %198 : vector<16x32xf32>
    %c1 = arith.constant 1 : index
    %c0_89 = arith.constant 0 : index
    %c0_90 = arith.constant 0 : index
    %200 = vector.load %arg7[%c1, %c0_89, %c0_90] : memref<2x32x96xf32, #tpu.memory_space<vmem>>, vector<1x32x96xf32>
    %201 = vector.shape_cast %200 : vector<1x32x96xf32> to vector<32x96xf32>
    %c1_91 = arith.constant 1 : index
    %c0_92 = arith.constant 0 : index
    %c0_93 = arith.constant 0 : index
    %202 = vector.load %arg9[%c1_91, %c0_92, %c0_93] : memref<2x32x32xf32, #tpu.memory_space<vmem>>, vector<1x32x32xf32>
    %203 = vector.shape_cast %202 : vector<1x32x32xf32> to vector<32x32xf32>
    %cst_94 = arith.constant dense<0.000000e+00> : vector<16x96xf32>
    %204 = tpu.matmul %199, %201, %cst_94 {dimension_numbers = #tpu.dot_dimension_numbers<[1], [0], [0], [1], [0, 0, 1, 1], [], []>} : vector<16x32xf32>, vector<32x96xf32>, vector<16x96xf32> -> vector<16x96xf32>
    %c1_95 = arith.constant 1 : index
    %c0_96 = arith.constant 0 : index
    %c0_97 = arith.constant 0 : index
    %205 = vector.load %arg8[%c1_95, %c0_96, %c0_97] : memref<2x1x96xf32, #tpu.memory_space<vmem>>, vector<1x1x96xf32>
    %206 = vector.shape_cast %205 : vector<1x1x96xf32> to vector<1x96xf32>
    %207 = vector.broadcast %206 : vector<1x96xf32> to vector<16x96xf32>
    %208 = arith.addf %204, %207 : vector<16x96xf32>
    %209 = vector.extract_strided_slice %208 {offsets = [0, 0], sizes = [16, 8], strides = [1, 1]} : vector<16x96xf32> to vector<16x8xf32>
    %210 = vector.extract_strided_slice %208 {offsets = [0, 32], sizes = [16, 8], strides = [1, 1]} : vector<16x96xf32> to vector<16x8xf32>
    %211 = vector.extract_strided_slice %208 {offsets = [0, 64], sizes = [16, 8], strides = [1, 1]} : vector<16x96xf32> to vector<16x8xf32>
    %cst_98 = arith.constant dense<0.000000e+00> : vector<16x16xf32>
    %212 = tpu.matmul %209, %210, %cst_98 {dimension_numbers = #tpu.dot_dimension_numbers<[1], [1], [0], [0], [0, 0, 1, 0], [], []>} : vector<16x8xf32>, vector<16x8xf32>, vector<16x16xf32> -> vector<16x16xf32>
    %213 = arith.addf %212, %34 : vector<16x16xf32>
    %cst_99 = arith.constant dense<0xFF800000> : vector<16xf32>
    %214 = vector.multi_reduction <maximumf>, %213, %cst_99 [1] : vector<16x16xf32> to vector<16xf32>
    %215 = vector.shape_cast %214 : vector<16xf32> to vector<16x1xf32>
    %216 = vector.broadcast %215 : vector<16x1xf32> to vector<16x16xf32>
    %217 = arith.subf %213, %216 : vector<16x16xf32>
    %218 = math.exp %217 : vector<16x16xf32>
    %cst_100 = arith.constant dense<0.000000e+00> : vector<16xf32>
    %219 = vector.multi_reduction <add>, %218, %cst_100 [1] : vector<16x16xf32> to vector<16xf32>
    %220 = vector.shape_cast %219 : vector<16xf32> to vector<16x1xf32>
    %221 = vector.broadcast %220 : vector<16x1xf32> to vector<16x16xf32>
    %222 = arith.divf %218, %221 : vector<16x16xf32>
    %cst_101 = arith.constant dense<0.000000e+00> : vector<16x8xf32>
    %223 = tpu.matmul %222, %211, %cst_101 {dimension_numbers = #tpu.dot_dimension_numbers<[1], [0], [0], [1], [0, 0, 1, 1], [], []>} : vector<16x16xf32>, vector<16x8xf32>, vector<16x8xf32> -> vector<16x8xf32>
    %224 = vector.extract_strided_slice %203 {offsets = [0, 0], sizes = [8, 32], strides = [1, 1]} : vector<32x32xf32> to vector<8x32xf32>
    %cst_102 = arith.constant dense<0.000000e+00> : vector<16x32xf32>
    %225 = tpu.matmul %223, %224, %cst_102 {dimension_numbers = #tpu.dot_dimension_numbers<[1], [0], [0], [1], [0, 0, 1, 1], [], []>} : vector<16x8xf32>, vector<8x32xf32>, vector<16x32xf32> -> vector<16x32xf32>
    %226 = vector.extract_strided_slice %208 {offsets = [0, 8], sizes = [16, 8], strides = [1, 1]} : vector<16x96xf32> to vector<16x8xf32>
    %227 = vector.extract_strided_slice %208 {offsets = [0, 40], sizes = [16, 8], strides = [1, 1]} : vector<16x96xf32> to vector<16x8xf32>
    %228 = vector.extract_strided_slice %208 {offsets = [0, 72], sizes = [16, 8], strides = [1, 1]} : vector<16x96xf32> to vector<16x8xf32>
    %cst_103 = arith.constant dense<0.000000e+00> : vector<16x16xf32>
    %229 = tpu.matmul %226, %227, %cst_103 {dimension_numbers = #tpu.dot_dimension_numbers<[1], [1], [0], [0], [0, 0, 1, 0], [], []>} : vector<16x8xf32>, vector<16x8xf32>, vector<16x16xf32> -> vector<16x16xf32>
    %230 = arith.addf %229, %34 : vector<16x16xf32>
    %cst_104 = arith.constant dense<0xFF800000> : vector<16xf32>
    %231 = vector.multi_reduction <maximumf>, %230, %cst_104 [1] : vector<16x16xf32> to vector<16xf32>
    %232 = vector.shape_cast %231 : vector<16xf32> to vector<16x1xf32>
    %233 = vector.broadcast %232 : vector<16x1xf32> to vector<16x16xf32>
    %234 = arith.subf %230, %233 : vector<16x16xf32>
    %235 = math.exp %234 : vector<16x16xf32>
    %cst_105 = arith.constant dense<0.000000e+00> : vector<16xf32>
    %236 = vector.multi_reduction <add>, %235, %cst_105 [1] : vector<16x16xf32> to vector<16xf32>
    %237 = vector.shape_cast %236 : vector<16xf32> to vector<16x1xf32>
    %238 = vector.broadcast %237 : vector<16x1xf32> to vector<16x16xf32>
    %239 = arith.divf %235, %238 : vector<16x16xf32>
    %cst_106 = arith.constant dense<0.000000e+00> : vector<16x8xf32>
    %240 = tpu.matmul %239, %228, %cst_106 {dimension_numbers = #tpu.dot_dimension_numbers<[1], [0], [0], [1], [0, 0, 1, 1], [], []>} : vector<16x16xf32>, vector<16x8xf32>, vector<16x8xf32> -> vector<16x8xf32>
    %241 = vector.extract_strided_slice %203 {offsets = [8, 0], sizes = [8, 32], strides = [1, 1]} : vector<32x32xf32> to vector<8x32xf32>
    %cst_107 = arith.constant dense<0.000000e+00> : vector<16x32xf32>
    %242 = tpu.matmul %240, %241, %cst_107 {dimension_numbers = #tpu.dot_dimension_numbers<[1], [0], [0], [1], [0, 0, 1, 1], [], []>} : vector<16x8xf32>, vector<8x32xf32>, vector<16x32xf32> -> vector<16x32xf32>
    %243 = arith.addf %225, %242 : vector<16x32xf32>
    %244 = vector.extract_strided_slice %208 {offsets = [0, 16], sizes = [16, 8], strides = [1, 1]} : vector<16x96xf32> to vector<16x8xf32>
    %245 = vector.extract_strided_slice %208 {offsets = [0, 48], sizes = [16, 8], strides = [1, 1]} : vector<16x96xf32> to vector<16x8xf32>
    %246 = vector.extract_strided_slice %208 {offsets = [0, 80], sizes = [16, 8], strides = [1, 1]} : vector<16x96xf32> to vector<16x8xf32>
    %cst_108 = arith.constant dense<0.000000e+00> : vector<16x16xf32>
    %247 = tpu.matmul %244, %245, %cst_108 {dimension_numbers = #tpu.dot_dimension_numbers<[1], [1], [0], [0], [0, 0, 1, 0], [], []>} : vector<16x8xf32>, vector<16x8xf32>, vector<16x16xf32> -> vector<16x16xf32>
    %248 = arith.addf %247, %34 : vector<16x16xf32>
    %cst_109 = arith.constant dense<0xFF800000> : vector<16xf32>
    %249 = vector.multi_reduction <maximumf>, %248, %cst_109 [1] : vector<16x16xf32> to vector<16xf32>
    %250 = vector.shape_cast %249 : vector<16xf32> to vector<16x1xf32>
    %251 = vector.broadcast %250 : vector<16x1xf32> to vector<16x16xf32>
    %252 = arith.subf %248, %251 : vector<16x16xf32>
    %253 = math.exp %252 : vector<16x16xf32>
    %cst_110 = arith.constant dense<0.000000e+00> : vector<16xf32>
    %254 = vector.multi_reduction <add>, %253, %cst_110 [1] : vector<16x16xf32> to vector<16xf32>
    %255 = vector.shape_cast %254 : vector<16xf32> to vector<16x1xf32>
    %256 = vector.broadcast %255 : vector<16x1xf32> to vector<16x16xf32>
    %257 = arith.divf %253, %256 : vector<16x16xf32>
    %cst_111 = arith.constant dense<0.000000e+00> : vector<16x8xf32>
    %258 = tpu.matmul %257, %246, %cst_111 {dimension_numbers = #tpu.dot_dimension_numbers<[1], [0], [0], [1], [0, 0, 1, 1], [], []>} : vector<16x16xf32>, vector<16x8xf32>, vector<16x8xf32> -> vector<16x8xf32>
    %259 = vector.extract_strided_slice %203 {offsets = [16, 0], sizes = [8, 32], strides = [1, 1]} : vector<32x32xf32> to vector<8x32xf32>
    %cst_112 = arith.constant dense<0.000000e+00> : vector<16x32xf32>
    %260 = tpu.matmul %258, %259, %cst_112 {dimension_numbers = #tpu.dot_dimension_numbers<[1], [0], [0], [1], [0, 0, 1, 1], [], []>} : vector<16x8xf32>, vector<8x32xf32>, vector<16x32xf32> -> vector<16x32xf32>
    %261 = arith.addf %243, %260 : vector<16x32xf32>
    %262 = vector.extract_strided_slice %208 {offsets = [0, 24], sizes = [16, 8], strides = [1, 1]} : vector<16x96xf32> to vector<16x8xf32>
    %263 = vector.extract_strided_slice %208 {offsets = [0, 56], sizes = [16, 8], strides = [1, 1]} : vector<16x96xf32> to vector<16x8xf32>
    %264 = vector.extract_strided_slice %208 {offsets = [0, 88], sizes = [16, 8], strides = [1, 1]} : vector<16x96xf32> to vector<16x8xf32>
    %cst_113 = arith.constant dense<0.000000e+00> : vector<16x16xf32>
    %265 = tpu.matmul %262, %263, %cst_113 {dimension_numbers = #tpu.dot_dimension_numbers<[1], [1], [0], [0], [0, 0, 1, 0], [], []>} : vector<16x8xf32>, vector<16x8xf32>, vector<16x16xf32> -> vector<16x16xf32>
    %266 = arith.addf %265, %34 : vector<16x16xf32>
    %cst_114 = arith.constant dense<0xFF800000> : vector<16xf32>
    %267 = vector.multi_reduction <maximumf>, %266, %cst_114 [1] : vector<16x16xf32> to vector<16xf32>
    %268 = vector.shape_cast %267 : vector<16xf32> to vector<16x1xf32>
    %269 = vector.broadcast %268 : vector<16x1xf32> to vector<16x16xf32>
    %270 = arith.subf %266, %269 : vector<16x16xf32>
    %271 = math.exp %270 : vector<16x16xf32>
    %cst_115 = arith.constant dense<0.000000e+00> : vector<16xf32>
    %272 = vector.multi_reduction <add>, %271, %cst_115 [1] : vector<16x16xf32> to vector<16xf32>
    %273 = vector.shape_cast %272 : vector<16xf32> to vector<16x1xf32>
    %274 = vector.broadcast %273 : vector<16x1xf32> to vector<16x16xf32>
    %275 = arith.divf %271, %274 : vector<16x16xf32>
    %cst_116 = arith.constant dense<0.000000e+00> : vector<16x8xf32>
    %276 = tpu.matmul %275, %264, %cst_116 {dimension_numbers = #tpu.dot_dimension_numbers<[1], [0], [0], [1], [0, 0, 1, 1], [], []>} : vector<16x16xf32>, vector<16x8xf32>, vector<16x8xf32> -> vector<16x8xf32>
    %277 = vector.extract_strided_slice %203 {offsets = [24, 0], sizes = [8, 32], strides = [1, 1]} : vector<32x32xf32> to vector<8x32xf32>
    %cst_117 = arith.constant dense<0.000000e+00> : vector<16x32xf32>
    %278 = tpu.matmul %276, %277, %cst_117 {dimension_numbers = #tpu.dot_dimension_numbers<[1], [0], [0], [1], [0, 0, 1, 1], [], []>} : vector<16x8xf32>, vector<8x32xf32>, vector<16x32xf32> -> vector<16x32xf32>
    %279 = arith.addf %261, %278 : vector<16x32xf32>
    %c1_118 = arith.constant 1 : index
    %c0_119 = arith.constant 0 : index
    %c0_120 = arith.constant 0 : index
    %280 = vector.load %arg10[%c1_118, %c0_119, %c0_120] : memref<2x1x32xf32, #tpu.memory_space<vmem>>, vector<1x1x32xf32>
    %281 = vector.shape_cast %280 : vector<1x1x32xf32> to vector<1x32xf32>
    %282 = vector.broadcast %281 : vector<1x32xf32> to vector<16x32xf32>
    %283 = arith.addf %279, %282 : vector<16x32xf32>
    %284 = arith.addf %283, %199 : vector<16x32xf32>
    %c1_121 = arith.constant 1 : index
    %c0_122 = arith.constant 0 : index
    %c0_123 = arith.constant 0 : index
    %285 = vector.load %arg11[%c1_121, %c0_122, %c0_123] : memref<2x1x32xf32, #tpu.memory_space<vmem>>, vector<1x1x32xf32>
    %286 = vector.shape_cast %285 : vector<1x1x32xf32> to vector<1x32xf32>
    %c1_124 = arith.constant 1 : index
    %c0_125 = arith.constant 0 : index
    %c0_126 = arith.constant 0 : index
    %287 = vector.load %arg12[%c1_124, %c0_125, %c0_126] : memref<2x1x32xf32, #tpu.memory_space<vmem>>, vector<1x1x32xf32>
    %288 = vector.shape_cast %287 : vector<1x1x32xf32> to vector<1x32xf32>
    %cst_127 = arith.constant dense<0.000000e+00> : vector<16xf32>
    %289 = vector.multi_reduction <add>, %284, %cst_127 [1] : vector<16x32xf32> to vector<16xf32>
    %290 = vector.shape_cast %289 : vector<16xf32> to vector<16x1xf32>
    %cst_128 = arith.constant 3.200000e+01 : f32
    %291 = vector.broadcast %cst_128 : f32 to vector<16x1xf32>
    %292 = arith.divf %290, %291 : vector<16x1xf32>
    %293 = vector.broadcast %292 : vector<16x1xf32> to vector<16x32xf32>
    %294 = arith.subf %284, %293 : vector<16x32xf32>
    %295 = arith.mulf %294, %294 : vector<16x32xf32>
    %cst_129 = arith.constant dense<0.000000e+00> : vector<16xf32>
    %296 = vector.multi_reduction <add>, %295, %cst_129 [1] : vector<16x32xf32> to vector<16xf32>
    %297 = vector.shape_cast %296 : vector<16xf32> to vector<16x1xf32>
    %cst_130 = arith.constant 3.200000e+01 : f32
    %298 = vector.broadcast %cst_130 : f32 to vector<16x1xf32>
    %299 = arith.divf %297, %298 : vector<16x1xf32>
    %300 = vector.broadcast %292 : vector<16x1xf32> to vector<16x32xf32>
    %301 = arith.subf %284, %300 : vector<16x32xf32>
    %cst_131 = arith.constant 9.99999996E-13 : f32
    %302 = vector.broadcast %cst_131 : f32 to vector<16x1xf32>
    %303 = arith.addf %299, %302 : vector<16x1xf32>
    %304 = math.rsqrt %303 : vector<16x1xf32>
    %305 = vector.broadcast %304 : vector<16x1xf32> to vector<16x32xf32>
    %306 = arith.mulf %301, %305 : vector<16x32xf32>
    %307 = vector.broadcast %286 : vector<1x32xf32> to vector<16x32xf32>
    %308 = arith.mulf %306, %307 : vector<16x32xf32>
    %309 = vector.broadcast %288 : vector<1x32xf32> to vector<16x32xf32>
    %310 = arith.addf %308, %309 : vector<16x32xf32>
    %c1_132 = arith.constant 1 : index
    %c0_133 = arith.constant 0 : index
    %c0_134 = arith.constant 0 : index
    %311 = vector.load %arg13[%c1_132, %c0_133, %c0_134] : memref<2x32x64xf32, #tpu.memory_space<vmem>>, vector<1x32x64xf32>
    %312 = vector.shape_cast %311 : vector<1x32x64xf32> to vector<32x64xf32>
    %cst_135 = arith.constant dense<0.000000e+00> : vector<16x64xf32>
    %313 = tpu.matmul %310, %312, %cst_135 {dimension_numbers = #tpu.dot_dimension_numbers<[1], [0], [0], [1], [0, 0, 1, 1], [], []>} : vector<16x32xf32>, vector<32x64xf32>, vector<16x64xf32> -> vector<16x64xf32>
    %c1_136 = arith.constant 1 : index
    %c0_137 = arith.constant 0 : index
    %c0_138 = arith.constant 0 : index
    %314 = vector.load %arg14[%c1_136, %c0_137, %c0_138] : memref<2x1x64xf32, #tpu.memory_space<vmem>>, vector<1x1x64xf32>
    %315 = vector.shape_cast %314 : vector<1x1x64xf32> to vector<1x64xf32>
    %316 = vector.broadcast %315 : vector<1x64xf32> to vector<16x64xf32>
    %317 = arith.addf %313, %316 : vector<16x64xf32>
    %cst_139 = arith.constant 5.000000e-01 : f32
    %318 = vector.broadcast %cst_139 : f32 to vector<16x64xf32>
    %319 = arith.mulf %318, %317 : vector<16x64xf32>
    %cst_140 = arith.constant 4.471500e-02 : f32
    %320 = vector.broadcast %cst_140 : f32 to vector<16x64xf32>
    %321 = arith.mulf %320, %317 : vector<16x64xf32>
    %322 = arith.mulf %321, %317 : vector<16x64xf32>
    %323 = arith.mulf %322, %317 : vector<16x64xf32>
    %324 = arith.addf %317, %323 : vector<16x64xf32>
    %cst_141 = arith.constant 0.797884583 : f32
    %325 = vector.broadcast %cst_141 : f32 to vector<16x64xf32>
    %326 = arith.mulf %325, %324 : vector<16x64xf32>
    %327 = math.tanh %326 : vector<16x64xf32>
    %cst_142 = arith.constant 1.000000e+00 : f32
    %328 = vector.broadcast %cst_142 : f32 to vector<16x64xf32>
    %329 = arith.addf %328, %327 : vector<16x64xf32>
    %330 = arith.mulf %319, %329 : vector<16x64xf32>
    %c1_143 = arith.constant 1 : index
    %c0_144 = arith.constant 0 : index
    %c0_145 = arith.constant 0 : index
    %331 = vector.load %arg15[%c1_143, %c0_144, %c0_145] : memref<2x64x32xf32, #tpu.memory_space<vmem>>, vector<1x64x32xf32>
    %332 = vector.shape_cast %331 : vector<1x64x32xf32> to vector<64x32xf32>
    %cst_146 = arith.constant dense<0.000000e+00> : vector<16x32xf32>
    %333 = tpu.matmul %330, %332, %cst_146 {dimension_numbers = #tpu.dot_dimension_numbers<[1], [0], [0], [1], [0, 0, 1, 1], [], []>} : vector<16x64xf32>, vector<64x32xf32>, vector<16x32xf32> -> vector<16x32xf32>
    %c1_147 = arith.constant 1 : index
    %c0_148 = arith.constant 0 : index
    %c0_149 = arith.constant 0 : index
    %334 = vector.load %arg16[%c1_147, %c0_148, %c0_149] : memref<2x1x32xf32, #tpu.memory_space<vmem>>, vector<1x1x32xf32>
    %335 = vector.shape_cast %334 : vector<1x1x32xf32> to vector<1x32xf32>
    %336 = vector.broadcast %335 : vector<1x32xf32> to vector<16x32xf32>
    %337 = arith.addf %333, %336 : vector<16x32xf32>
    %338 = arith.addf %337, %310 : vector<16x32xf32>
    %c1_150 = arith.constant 1 : index
    %c0_151 = arith.constant 0 : index
    %c0_152 = arith.constant 0 : index
    %339 = vector.load %arg17[%c1_150, %c0_151, %c0_152] : memref<2x1x32xf32, #tpu.memory_space<vmem>>, vector<1x1x32xf32>
    %340 = vector.shape_cast %339 : vector<1x1x32xf32> to vector<1x32xf32>
    %c1_153 = arith.constant 1 : index
    %c0_154 = arith.constant 0 : index
    %c0_155 = arith.constant 0 : index
    %341 = vector.load %arg18[%c1_153, %c0_154, %c0_155] : memref<2x1x32xf32, #tpu.memory_space<vmem>>, vector<1x1x32xf32>
    %342 = vector.shape_cast %341 : vector<1x1x32xf32> to vector<1x32xf32>
    %cst_156 = arith.constant dense<0.000000e+00> : vector<16xf32>
    %343 = vector.multi_reduction <add>, %338, %cst_156 [1] : vector<16x32xf32> to vector<16xf32>
    %344 = vector.shape_cast %343 : vector<16xf32> to vector<16x1xf32>
    %cst_157 = arith.constant 3.200000e+01 : f32
    %345 = vector.broadcast %cst_157 : f32 to vector<16x1xf32>
    %346 = arith.divf %344, %345 : vector<16x1xf32>
    %347 = vector.broadcast %346 : vector<16x1xf32> to vector<16x32xf32>
    %348 = arith.subf %338, %347 : vector<16x32xf32>
    %349 = arith.mulf %348, %348 : vector<16x32xf32>
    %cst_158 = arith.constant dense<0.000000e+00> : vector<16xf32>
    %350 = vector.multi_reduction <add>, %349, %cst_158 [1] : vector<16x32xf32> to vector<16xf32>
    %351 = vector.shape_cast %350 : vector<16xf32> to vector<16x1xf32>
    %cst_159 = arith.constant 3.200000e+01 : f32
    %352 = vector.broadcast %cst_159 : f32 to vector<16x1xf32>
    %353 = arith.divf %351, %352 : vector<16x1xf32>
    %354 = vector.broadcast %346 : vector<16x1xf32> to vector<16x32xf32>
    %355 = arith.subf %338, %354 : vector<16x32xf32>
    %cst_160 = arith.constant 9.99999996E-13 : f32
    %356 = vector.broadcast %cst_160 : f32 to vector<16x1xf32>
    %357 = arith.addf %353, %356 : vector<16x1xf32>
    %358 = math.rsqrt %357 : vector<16x1xf32>
    %359 = vector.broadcast %358 : vector<16x1xf32> to vector<16x32xf32>
    %360 = arith.mulf %355, %359 : vector<16x32xf32>
    %361 = vector.broadcast %340 : vector<1x32xf32> to vector<16x32xf32>
    %362 = arith.mulf %360, %361 : vector<16x32xf32>
    %363 = vector.broadcast %342 : vector<1x32xf32> to vector<16x32xf32>
    %364 = arith.addf %362, %363 : vector<16x32xf32>
    %365 = vector.extract_strided_slice %364 {offsets = [0, 0], sizes = [1, 32], strides = [1, 1]} : vector<16x32xf32> to vector<1x32xf32>
    %366 = vector.extract_strided_slice %364 {offsets = [1, 0], sizes = [1, 32], strides = [1, 1]} : vector<16x32xf32> to vector<1x32xf32>
    %367 = vector.extract_strided_slice %364 {offsets = [2, 0], sizes = [1, 32], strides = [1, 1]} : vector<16x32xf32> to vector<1x32xf32>
    %368 = vector.extract_strided_slice %364 {offsets = [3, 0], sizes = [1, 32], strides = [1, 1]} : vector<16x32xf32> to vector<1x32xf32>
    %369 = tpu.concatenate %365, %366, %367, %368 in 1 : vector<1x32xf32>, vector<1x32xf32>, vector<1x32xf32>, vector<1x32xf32> -> vector<1x128xf32>
    %370 = vector.extract_strided_slice %364 {offsets = [8, 0], sizes = [1, 32], strides = [1, 1]} : vector<16x32xf32> to vector<1x32xf32>
    %371 = vector.extract_strided_slice %364 {offsets = [9, 0], sizes = [1, 32], strides = [1, 1]} : vector<16x32xf32> to vector<1x32xf32>
    %372 = vector.extract_strided_slice %364 {offsets = [10, 0], sizes = [1, 32], strides = [1, 1]} : vector<16x32xf32> to vector<1x32xf32>
    %373 = vector.extract_strided_slice %364 {offsets = [11, 0], sizes = [1, 32], strides = [1, 1]} : vector<16x32xf32> to vector<1x32xf32>
    %374 = tpu.concatenate %370, %371, %372, %373 in 1 : vector<1x32xf32>, vector<1x32xf32>, vector<1x32xf32>, vector<1x32xf32> -> vector<1x128xf32>
    %375 = tpu.concatenate %369, %374 in 0 : vector<1x128xf32>, vector<1x128xf32> -> vector<2x128xf32>
    %c0_161 = arith.constant 0 : index
    %c0_162 = arith.constant 0 : index
    %376 = vector.load %arg19[%c0_161, %c0_162] : memref<2x128xf32, #tpu.memory_space<vmem>>, vector<2x128xf32>
    tpu.vector_store %arg19[%c0_161, %c0_162], %375 {strides = array<i32>} : memref<2x128xf32, #tpu.memory_space<vmem>>, vector<2x128xf32>,
    return
  }
  func.func @transform_0(%arg0: i32) -> (i32, i32) {
    %c0_i32 = arith.constant 0 : i32
    %c0_i32_0 = arith.constant 0 : i32
    %c0_i32_1 = arith.constant 0 : i32
    return %c0_i32, %c0_i32_0 : i32, i32
  }
  func.func @transform_1(%arg0: i32) -> (i32, i32) {
    %c0_i32 = arith.constant 0 : i32
    %c0_i32_0 = arith.constant 0 : i32
    %c0_i32_1 = arith.constant 0 : i32
    return %c0_i32, %c0_i32_0 : i32, i32
  }
  func.func @transform_2(%arg0: i32) -> (i32, i32) {
    %c0_i32 = arith.constant 0 : i32
    %c0_i32_0 = arith.constant 0 : i32
    %c0_i32_1 = arith.constant 0 : i32
    return %c0_i32, %c0_i32_0 : i32, i32
  }
  func.func @transform_3(%arg0: i32) -> (i32, i32) {
    %c0_i32 = arith.constant 0 : i32
    %c0_i32_0 = arith.constant 0 : i32
    %c0_i32_1 = arith.constant 0 : i32
    return %c0_i32, %c0_i32_0 : i32, i32
  }
  func.func @transform_4(%arg0: i32) -> (i32, i32) {
    %c0_i32 = arith.constant 0 : i32
    %c0_i32_0 = arith.constant 0 : i32
    %c0_i32_1 = arith.constant 0 : i32
    return %c0_i32, %c0_i32_0 : i32, i32
  }
  func.func @transform_5(%arg0: i32) -> (i32, i32) {
    %c0_i32 = arith.constant 0 : i32
    %c0_i32_0 = arith.constant 0 : i32
    %c0_i32_1 = arith.constant 0 : i32
    return %c0_i32, %c0_i32_0 : i32, i32
  }
  func.func @transform_6(%arg0: i32) -> (i32, i32, i32) {
    %c0_i32 = arith.constant 0 : i32
    %c0_i32_0 = arith.constant 0 : i32
    %c0_i32_1 = arith.constant 0 : i32
    %c0_i32_2 = arith.constant 0 : i32
    return %c0_i32, %c0_i32_0, %c0_i32_1 : i32, i32, i32
  }
  func.func @transform_7(%arg0: i32) -> (i32, i32, i32) {
    %c0_i32 = arith.constant 0 : i32
    %c0_i32_0 = arith.constant 0 : i32
    %c0_i32_1 = arith.constant 0 : i32
    %c0_i32_2 = arith.constant 0 : i32
    return %c0_i32, %c0_i32_0, %c0_i32_1 : i32, i32, i32
  }
  func.func @transform_8(%arg0: i32) -> (i32, i32, i32) {
    %c0_i32 = arith.constant 0 : i32
    %c0_i32_0 = arith.constant 0 : i32
    %c0_i32_1 = arith.constant 0 : i32
    %c0_i32_2 = arith.constant 0 : i32
    return %c0_i32, %c0_i32_0, %c0_i32_1 : i32, i32, i32
  }
  func.func @transform_9(%arg0: i32) -> (i32, i32, i32) {
    %c0_i32 = arith.constant 0 : i32
    %c0_i32_0 = arith.constant 0 : i32
    %c0_i32_1 = arith.constant 0 : i32
    %c0_i32_2 = arith.constant 0 : i32
    return %c0_i32, %c0_i32_0, %c0_i32_1 : i32, i32, i32
  }
  func.func @transform_10(%arg0: i32) -> (i32, i32, i32) {
    %c0_i32 = arith.constant 0 : i32
    %c0_i32_0 = arith.constant 0 : i32
    %c0_i32_1 = arith.constant 0 : i32
    %c0_i32_2 = arith.constant 0 : i32
    return %c0_i32, %c0_i32_0, %c0_i32_1 : i32, i32, i32
  }
  func.func @transform_11(%arg0: i32) -> (i32, i32, i32) {
    %c0_i32 = arith.constant 0 : i32
    %c0_i32_0 = arith.constant 0 : i32
    %c0_i32_1 = arith.constant 0 : i32
    %c0_i32_2 = arith.constant 0 : i32
    return %c0_i32, %c0_i32_0, %c0_i32_1 : i32, i32, i32
  }
  func.func @transform_12(%arg0: i32) -> (i32, i32, i32) {
    %c0_i32 = arith.constant 0 : i32
    %c0_i32_0 = arith.constant 0 : i32
    %c0_i32_1 = arith.constant 0 : i32
    %c0_i32_2 = arith.constant 0 : i32
    return %c0_i32, %c0_i32_0, %c0_i32_1 : i32, i32, i32
  }
  func.func @transform_13(%arg0: i32) -> (i32, i32, i32) {
    %c0_i32 = arith.constant 0 : i32
    %c0_i32_0 = arith.constant 0 : i32
    %c0_i32_1 = arith.constant 0 : i32
    %c0_i32_2 = arith.constant 0 : i32
    return %c0_i32, %c0_i32_0, %c0_i32_1 : i32, i32, i32
  }
  func.func @transform_14(%arg0: i32) -> (i32, i32, i32) {
    %c0_i32 = arith.constant 0 : i32
    %c0_i32_0 = arith.constant 0 : i32
    %c0_i32_1 = arith.constant 0 : i32
    %c0_i32_2 = arith.constant 0 : i32
    return %c0_i32, %c0_i32_0, %c0_i32_1 : i32, i32, i32
  }
  func.func @transform_15(%arg0: i32) -> (i32, i32, i32) {
    %c0_i32 = arith.constant 0 : i32
    %c0_i32_0 = arith.constant 0 : i32
    %c0_i32_1 = arith.constant 0 : i32
    %c0_i32_2 = arith.constant 0 : i32
    return %c0_i32, %c0_i32_0, %c0_i32_1 : i32, i32, i32
  }
  func.func @transform_16(%arg0: i32) -> (i32, i32, i32) {
    %c0_i32 = arith.constant 0 : i32
    %c0_i32_0 = arith.constant 0 : i32
    %c0_i32_1 = arith.constant 0 : i32
    %c0_i32_2 = arith.constant 0 : i32
    return %c0_i32, %c0_i32_0, %c0_i32_1 : i32, i32, i32
  }
  func.func @transform_17(%arg0: i32) -> (i32, i32, i32) {
    %c0_i32 = arith.constant 0 : i32
    %c0_i32_0 = arith.constant 0 : i32
    %c0_i32_1 = arith.constant 0 : i32
    %c0_i32_2 = arith.constant 0 : i32
    return %c0_i32, %c0_i32_0, %c0_i32_1 : i32, i32, i32
  }
  func.func @transform_18(%arg0: i32) -> (i32, i32) {
    %c0_i32 = arith.constant 0 : i32
    %c0_i32_0 = arith.constant 0 : i32
    %c0_i32_1 = arith.constant 0 : i32
    return %c0_i32, %c0_i32_0 : i32, i32
  }
}

</mosaic_0001>

<bundles_post_ra>
// kernel: eq.8
= control target key start
LH: loop header
LB: loop body
LE: loop exit
PB: predicated region body
PF: predicated region fallthrough
CT: control target
= control target key end

     0   :  { %vm7_vm0 = vcmask 64512   ;;  %vm13_vm1 = vcmask 130112   ;;  %s39_s0 = inlined_call_operand.vmem [shape: s32[2,8], index: 0, kind: input, shape index: {}]   ;;  %s40_s1 = inlined_call_operand.vmem [shape: s32[16], index: 1, kind: output, shape index: {}]  }
   0x1   :  { %v4_v0 = vld [vmem:[%s39_s0] sm:$0x3]  ;;  %s22_s0 = smov 8  }
   0x2   :  { %5 = vst [vmem:[#allocation1] sm:$0x3] %v4_v0 }
   0x9   :  { %v10_v1 = vld [vmem:[#allocation1 + $0x1] sm:$0x1]   ;;  %v6_v2 = vld [vmem:[#allocation1] sm:$0x1]  }
   0xa   :  { %11 = vrot.lane.b32.xlu0 %v10_v1, %s22_s0  ;;  %8 = vst.msk [vmem:[#allocation0] sm:$0x1] %vm7_vm0, %v6_v2  }
  0x7c   :  { %v12_v3 = vpop.permute.xlu0 %11  }
  0x7d   :  { %14 = vst.msk [vmem:[#allocation0] sm:$0x1] %vm13_vm1, %v12_v3  }
  0x84   :  { %v18_v4 = vld [vmem:[#allocation0] sm:$0x1] }
  0x85   :  { %20 = vst [vmem:[%s40_s1] sm:$0x1] %v18_v4 }

// kernel: bert_encoder_forward.1
= control target key start
LH: loop header
LB: loop body
LE: loop exit
PB: predicated region body
PF: predicated region fallthrough
CT: control target
= control target key end

     0   :  { %s4970_s0 = inlined_call_operand.vmem [shape: s32[16,1], index: 0, kind: input, shape index: {}]   ;;  %s4971_s1 = inlined_call_operand.vmem [shape: f32[16,16], index: 1, kind: input, shape index: {}]   ;;  %s4972_s2 = inlined_call_operand.hbm [shape: f32[128,32], index: 2, kind: input, shape index: {}]   ;;  %s4973_s3 = inlined_call_operand.vmem [shape: f32[16,32], index: 3, kind: input, shape index: {}]   ;;  %s4974_s4 = inlined_call_operand.vmem [shape: f32[1,32], index: 4, kind: input, shape index: {}]   ;;  %s4975_s5 = inlined_call_operand.vmem [shape: f32[1,32], index: 5, kind: input, shape index: {}]   ;;  %s4976_s6 = inlined_call_operand.vmem [shape: f32[2,32,96], index: 6, kind: input, shape index: {}]   ;;  %s4977_s7 = inlined_call_operand.vmem [shape: f32[2,1,96], index: 7, kind: input, shape index: {}]   ;;  %s4978_s8 = inlined_call_operand.hbm [shape: f32[2,32,32], index: 8, kind: input, shape index: {}]   ;;  %s4979_s9 = inlined_call_operand.vmem [shape: f32[2,1,32], index: 9, kind: input, shape index: {}, may-alias: {9,11,15,17}]   ;;  %s4980_s10 = inlined_call_operand.vmem [shape: f32[2,1,32], index: 10, kind: input, shape index: {}, may-alias: {10,16}]   ;;  %s4981_s11 = inlined_call_operand.vmem [shape: f32[2,1,32], index: 11, kind: input, shape index: {}, may-alias: {9,11,15,17}]   ;;  %s4982_s12 = inlined_call_operand.hbm [shape: f32[2,32,64], index: 12, kind: input, shape index: {}]   ;;  %s4983_s13 = inlined_call_operand.vmem [shape: f32[2,1,64], index: 13, kind: input, shape index: {}]   ;;  %s4984_s14 = inlined_call_operand.hbm [shape: f32[2,64,32], index: 14, kind: input, shape index: {}]   ;;  %s4985_s15 = inlined_call_operand.vmem [shape: f32[2,1,32], index: 15, kind: input, shape index: {}, may-alias: {9,11,15,17}]   ;;  %s4986_s16 = inlined_call_operand.vmem [shape: f32[2,1,32], index: 16, kind: input, shape index: {}, may-alias: {10,16}]   ;;  %s4987_s17 = inlined_call_operand.vmem [shape: f32[2,1,32], index: 17, kind: input, shape index: {}, may-alias: {9,11,15,17}]   ;;  %s4988_s18 = inlined_call_operand.vmem [shape: f32[2,128], index: 18, kind: output, shape index: {}]  }
   0x1   :  { %4992 = sst [smem:[#allocation12_spill]] %s4970_s0 }
   0x2   :  { %4993 = sst [smem:[#allocation13_spill]] %s4971_s1 }
   0x3   :  { %4994 = sst [smem:[#allocation14_spill]] %s4972_s2 }
   0x4   :  { %4995 = sst [smem:[#allocation15_spill]] %s4988_s18 }
   0x5   :  { %23 = vsyncpa [#allocation3], 0 }
   0x6   :  { %24 = vsyncpa [#allocation5], 0 }
   0x7   :  { %25 = vsyncpa [#allocation8], 0  ;;  %s4396_s27 = smov [#allocation4]   ;;  %s4397_s29 = smov [#allocation2]  }
   0x8   :  { %s57_s28 = sshll.u32 %s4396_s27, 4  ;;  %s35_s30 = sshll.u32 %s4397_s29, 4  ;;  %s58_s28 = int_to_ptr.vmem [resolvable:$true] %s57_s28  ;;  %s4511_s30 = int_to_ptr.vmem [resolvable:$true] %s35_s30 }
   0x9   :  { %s4302_s1 = scalar_lea.hbm %s4978_s8, 1024 }
   0xa   :  { %p4303_p0 = scmp.ne.s32.totalorder %s4978_s8, %s4302_s1  ;;  %p4306_p1 = scmp.lt.u32.totalorder %s4302_s1, %s4978_s8 }
   0xc   :  { %p4308_p2 = pnand %p4306_p1, %p4303_p0 }
   0xe   :  { %4311 = shalt.err (!%p4308_p2)
}
   0xf   :  { %s4312_s23 = scalar_lea.vmem %s58_s28, 1024  ;;  %p4317_p4 = scmp.lt.s32.totalorder %s58_s28, %s58_s28 }
  0x10   :  { %p4313_p3 = scmp.ne.s32.totalorder %s58_s28, %s4312_s23  ;;  %p4318_p5 = scmp.lt.s32.totalorder %s4312_s23, %s4312_s23 }
  0x12   :  { %p4319_p6 = por %p4318_p5, %p4317_p4 }
  0x14   :  { %p4320_p7 = pnand %p4319_p6, %p4313_p3 }
  0x16   :  { %4323 = shalt.err (!%p4320_p7)
}
  0x17   :  { %s4398_s24 = smov 128   ;;  %s4399_s25 = smov 8  }
  0x18   :  { %63 = dma.hbm_to_vmem [thread:$0]  %s4978_s8, 1024, %s58_s28, [#allocation5], %s4398_s24, %s4398_s24, %s4399_s25  }
  0x19   :  { %s4996_s19 = sld [smem:[#allocation14_spill]] }
  0x1f   :  { %s4324_s1 = scalar_lea.hbm %s4996_s19, 2048 }
  0x20   :  { %p4325_p8 = scmp.ne.s32.totalorder %s4996_s19, %s4324_s1  ;;  %p4328_p9 = scmp.lt.u32.totalorder %s4324_s1, %s4996_s19 }
  0x22   :  { %p4330_p10 = pnand %p4328_p9, %p4325_p8 }
  0x24   :  { %4333 = shalt.err (!%p4330_p10)
}
  0x25   :  { %s4334_s23 = scalar_lea.vmem %s4511_s30, 2048  ;;  %p4339_p12 = scmp.lt.s32.totalorder %s4511_s30, %s4511_s30 }
  0x26   :  { %p4335_p11 = scmp.ne.s32.totalorder %s4511_s30, %s4334_s23  ;;  %p4340_p13 = scmp.lt.s32.totalorder %s4334_s23, %s4334_s23 }
  0x28   :  { %p4341_p0 = por %p4340_p13, %p4339_p12 }
  0x2a   :  { %p4342_p1 = pnand %p4341_p0, %p4335_p11 }
  0x2c   :  { %4345 = shalt.err (!%p4342_p1)
}
  0x2d   :  { %41 = dma.hbm_to_vmem [thread:$0]  %s4996_s19, 2048, %s4511_s30, [#allocation3], %s4398_s24, %s4398_s24, %s4399_s25  }
  0x2e   :  { %s4400_s26 = smov [#allocation6]   ;;  %s4401_s29 = smov [#allocation7]  }
  0x2f   :  { %s75_s27 = sshll.u32 %s4400_s26, 4  ;;  %s89_s0 = sshll.u32 %s4401_s29, 4  ;;  %s76_s27 = int_to_ptr.vmem [resolvable:$true] %s75_s27  ;;  %s4548_s0 = int_to_ptr.vmem [resolvable:$true] %s89_s0 }
  0x30   :  { %s4346_s21 = scalar_lea.hbm %s4982_s12, 1024 }
  0x31   :  { %p4347_p2 = scmp.ne.s32.totalorder %s4982_s12, %s4346_s21  ;;  %p4350_p3 = scmp.lt.u32.totalorder %s4346_s21, %s4982_s12 }
  0x33   :  { %p4352_p4 = pnand %p4350_p3, %p4347_p2 }
  0x35   :  { %4355 = shalt.err (!%p4352_p4)
}
  0x36   :  { %s4356_s30 = scalar_lea.vmem %s76_s27, 1024  ;;  %p4361_p6 = scmp.lt.s32.totalorder %s76_s27, %s76_s27 }
  0x37   :  { %p4357_p5 = scmp.ne.s32.totalorder %s76_s27, %s4356_s30  ;;  %p4362_p7 = scmp.lt.s32.totalorder %s4356_s30, %s4356_s30 }
  0x39   :  { %p4363_p8 = por %p4362_p7, %p4361_p6 }
  0x3b   :  { %p4364_p9 = pnand %p4363_p8, %p4357_p5 }
  0x3d   :  { %4367 = shalt.err (!%p4364_p9)
}
  0x3e   :  { %81 = dma.hbm_to_vmem [thread:$0]  %s4982_s12, 1024, %s76_s27, [#allocation5], %s4398_s24, %s4398_s24, %s4399_s25  }
  0x3f   :  { %s4368_s18 = scalar_lea.hbm %s4984_s14, 2048 }
  0x40   :  { %p4369_p10 = scmp.ne.s32.totalorder %s4984_s14, %s4368_s18  ;;  %p4372_p11 = scmp.lt.u32.totalorder %s4368_s18, %s4984_s14 }
  0x42   :  { %p4374_p12 = pnand %p4372_p11, %p4369_p10 }
  0x44   :  { %4377 = shalt.err (!%p4374_p12)
}
  0x45   :  { %s4378_s22 = scalar_lea.vmem %s4548_s0, 2048  ;;  %p4383_p0 = scmp.lt.s32.totalorder %s4548_s0, %s4548_s0 }
  0x46   :  { %p4379_p13 = scmp.ne.s32.totalorder %s4548_s0, %s4378_s22  ;;  %p4384_p1 = scmp.lt.s32.totalorder %s4378_s22, %s4378_s22 }
  0x48   :  { %p4385_p2 = por %p4384_p1, %p4383_p0 }
  0x4a   :  { %p4386_p3 = pnand %p4385_p2, %p4379_p13 }
  0x4c   :  { %4389 = shalt.err (!%p4386_p3)
}
  0x4d   :  { %95 = dma.hbm_to_vmem [thread:$0]  %s4984_s14, 2048, %s4548_s0, [#allocation8], %s4398_s24, %s4398_s24, %s4399_s25  }
  0x4e   :  { %4390 = dma.done.wait [#allocation3], 2048  }
  0x4f   :  { %4391 = vsyncadd [#allocation3], 4294965248 }
  0x50   :  { %4392 = dma.done.wait [#allocation5], 2048  }
  0x51   :  { %4393 = vsyncadd [#allocation5], 4294965248 }
  0x52   :  { %4394 = dma.done.wait [#allocation8], 2048  }
  0x53   :  { %4395 = vsyncadd [#allocation8], 4294965248  ;;  %v4402_v0 = vmov 0   ;;  %s4997_s30 = sld [smem:[#allocation12_spill]]  ;;  %v130_v2 = vld [vmem:[#allocation2] sm:$0xff]  ;;  %v131_v3 = vld [vmem:[#allocation2 + $0x8] sm:$0xff]  ;;  %v116_v27 = vlaneseq }
  0x54   :  { %4127 = vset.pattern.permute.xlu0 %v4402_v0  ;;  %v132_v4 = vld [vmem:[#allocation2 + $0x10] sm:$0xff]  ;;  %v133_v5 = vld [vmem:[#allocation2 + $0x18] sm:$0xff]  ;;  %v3919_v7 = vpack.c.bf16 %v131_v3, %v130_v2  ;;  %v134_v9 = vld [vmem:[#allocation2 + $0x20] sm:$0xff]  ;;  %v4403_v30 = vmov 1.0   ;;  %vm225_vm2 = vcmask 261120   ;;  %vm373_vm3 = vcmask 64512  }
  0x55   :  { %v3923_v8 = vpack.c.bf16 %v133_v5, %v132_v4  ;;  %v135_v10 = vld [vmem:[#allocation2 + $0x28] sm:$0xff]  ;;  %v136_v12 = vld [vmem:[#allocation2 + $0x30] sm:$0xff]  ;;  %v137_v13 = vld [vmem:[#allocation2 + $0x38] sm:$0xff]  ;;  %v117_v28 = vand.u32 127, %v116_v27  ;;  %s5000_s8 = sld [smem:[#allocation13_spill]]  ;;  %vm457_vm5 = vcmask 130048  }
  0x56   :  { %3920 = vmatprep.subr.bf16.mxu0 %v3919_v7  ;;  %v3927_v11 = vpack.c.bf16 %v135_v10, %v134_v9  ;;  %v3931_v14 = vpack.c.bf16 %v137_v13, %v136_v12  ;;  %v138_v15 = vld [vmem:[#allocation2 + $0x40] sm:$0xff]  ;;  %v139_v16 = vld [vmem:[#allocation2 + $0x48] sm:$0xff]  ;;  %v140_v18 = vld [vmem:[#allocation2 + $0x50] sm:$0xff]  ;;  %s4405_s25 = smov 88   ;;  %s4406_s0 = smov 64   ;;  %vm1675_vm6 = vcmask 523264  }
  0x57   :  { %3922 = vmatpush3.bf16.msra.mxu0 %v3919_v7  ;;  %v3935_v17 = vpack.c.bf16 %v139_v16, %v138_v15  ;;  %v141_v19 = vld [vmem:[#allocation2 + $0x58] sm:$0xff]  ;;  %v142_v21 = vld [vmem:[#allocation2 + $0x60] sm:$0xff]  ;;  %v143_v22 = vld [vmem:[#allocation2 + $0x68] sm:$0xff]  ;;  %s4408_s28 = smov 56   ;;  %s4409_s26 = smov 112   ;;  %vm3359_vm7 = vcmask 785408  }
  0x58   :  { %3924 = vmatprep.subr.bf16.mxu0 %v3923_v8  ;;  %v3939_v20 = vpack.c.bf16 %v141_v19, %v140_v18  ;;  %v3943_v23 = vpack.c.bf16 %v143_v22, %v142_v21  ;;  %v144_v24 = vld [vmem:[#allocation2 + $0x70] sm:$0xff]  ;;  %v145_v25 = vld [vmem:[#allocation2 + $0x78] sm:$0xff]  ;;  %v147_v34 = vld [vmem:[%s4973_s3 + $0x8] sm:$0xff]  ;;  %s4410_s18 = smov 104   ;;  %s4411_s29 = smov 80   ;;  %vm3380_vm8 = vcmask 1040384  }
  0x59   :  { %v114_v1 = vld [vmem:[%s4997_s30] sm:$0xff]  ;;  %v115_v6 = vld [vmem:[%s4997_s30 + $0x8] sm:$0xff]  ;;  %v3947_v26 = vpack.c.bf16 %v145_v25, %v144_v24  ;;  %v273_v52 = vld [vmem:[%s4976_s6 + $0x10] sm:$0xff]  ;;  %s4412_s1 = smov 72   ;;  %s4413_s20 = smov 48  }
  0x5a   :  { %119 = vperm.xlu0 %4127, %v114_v1   ;;  %v146_v32 = vld [vmem:[%s4973_s3] sm:$0xff]  ;;  %v272_v51 = vld [vmem:[%s4976_s6 + $0x8] sm:$0xff]  ;;  %v274_v54 = vld [vmem:[%s4976_s6 + $0x18] sm:$0xff]  ;;  %s4407_s3 = smov 120   ;;  %s4414_s21 = smov 40  }
  0x5b   :  { %3926 = vmatpush3.bf16.msra.mxu0 %v3923_v8  ;;  %v271_v50 = vld [vmem:[%s4976_s6] sm:$0xff]  ;;  %v3955_v55 = vpack.c.bf16 %v274_v54, %v273_v52  ;;  %vm4644_vm4 = vmpackc.low %vm373_vm3, %vm373_vm3  ;;  %v4657_v19 = vld [vmem:[%s5000_s8 + $0x8] sm:$0xff]  ;;  %s4415_s23 = smov 32  }
  0x5c   :  { %3928 = vmatprep.subr.bf16.mxu0 %v3927_v11  ;;  %v3951_v53 = vpack.c.bf16 %v272_v51, %v271_v50  ;;  %v3394_v63 = vld [vmem:[%s4974_s4] ss:$0 sm:$0xff] }
  0x5d   :  { %v3395_v1 = vld [vmem:[%s4975_s5] ss:$0 sm:$0xff]  ;;  %s4404_s5 = smov 96  }
  0x5e   :  { %122 = vperm.xlu0 %4127, %v115_v6   ;;  %3952 = vmatprep.subr.bf16.mxu1 %v3951_v53  ;;  %v3396_v8 = vld [vmem:[%s4977_s7] ss:$0 sm:$0xff] }
  0x5f   :  { %3930 = vmatpush3.bf16.msra.mxu0 %v3927_v11  ;;  %3954 = vmatpush3.bf16.msra.mxu1 %v3951_v53 }
  0x60   :  { %3932 = vmatprep.subr.bf16.mxu0 %v3931_v14  ;;  %3956 = vmatprep.subr.bf16.mxu1 %v3955_v55 }
  0x63   :  { %3934 = vmatpush3.bf16.msra.mxu0 %v3931_v14  ;;  %3958 = vmatpush3.bf16.msra.mxu1 %v3955_v55 }
  0x64   :  { %3936 = vmatprep.subr.bf16.mxu0 %v3935_v17 }
  0x67   :  { %3938 = vmatpush3.bf16.msra.mxu0 %v3935_v17 }
  0x68   :  { %3940 = vmatprep.subr.bf16.mxu0 %v3939_v20 }
  0x6b   :  { %3942 = vmatpush3.bf16.msra.mxu0 %v3939_v20  ;;  %v4662_v20 = vld [vmem:[%s5000_s8] sm:$0xff] }
  0x6c   :  { %3944 = vmatprep.subr.bf16.mxu0 %v3943_v23 }
  0x6f   :  { %3946 = vmatpush3.bf16.msra.mxu0 %v3943_v23 }
  0x70   :  { %3948 = vmatprep.subr.bf16.mxu0 %v3947_v26 }
  0x73   :  { %3950 = vmatpush3.bf16.msra.mxu0 %v3947_v26 }
  0xd9   :  { %v120_v29 = vpop.permute.xlu0 %119 }
  0xda   :  { %vm124_vm0 = vcmp.eq.s32.totalorder %v117_v28, %v120_v29 }
  0xdb   :  { %3682 = vmatprep.mubr.msk.f32.mxu0 %vm124_vm0, %v4403_v30 }
  0xdd   :  { %v123_v31 = vpop.permute.xlu0 %122 }
  0xde   :  { %vm125_vm1 = vcmp.eq.s32.totalorder %v117_v28, %v123_v31 }
  0xdf   :  { %3683 = vmatmul.mubr.msk.f32.vlgmr.msra.gmra.mrb[0].mxu0 %vm125_vm1, %v4403_v30 }
 0x1b2   :  { %v3684_v33 = vpop.f32.mrb[0].mxu0 }
 0x1b3   :  { %v214_v35 = vpop.f32.mrb[1].mxu0  ;;  %v220_v37 = vadd.f32 %v3684_v33, %v147_v34 }
 0x1b4   :  { %v215_v36 = vadd.f32 %v214_v35, %v146_v32 }
 0x1b5   :  { %v229_v39 = vsel %vm225_vm2, %v220_v37, 0.0 }
 0x1b6   :  { %v226_v38 = vsel %vm225_vm2, %v215_v36, 0.0 }
 0x1b7   :  { %227 = vadd.xlane.f32.xlu1 %v226_v38 }
 0x1bb   :  { %230 = vadd.xlane.f32.xlu1 %v229_v39 }
 0x244   :  { %v228_v40 = vpop.xlane.xlu1 %227 }
 0x245   :  { %v233_v41 = vmul.f32 0.03125, %v228_v40 }
 0x247   :  { %v235_v42 = vsub.f32 %v215_v36, %v233_v41 }
 0x248   :  { %v231_v43 = vpop.xlane.xlu1 %230 }
 0x249   :  { %v234_v44 = vmul.f32 0.03125, %v231_v43  ;;  %v237_v45 = vmul.f32 %v235_v42, %v235_v42 }
 0x24b   :  { %v236_v46 = vsub.f32 %v220_v37, %v234_v44  ;;  %v239_v47 = vsel %vm225_vm2, %v237_v45, 0.0 }
 0x24c   :  { %240 = vadd.xlane.f32.xlu0 %v239_v47 }
 0x24d   :  { %v238_v48 = vmul.f32 %v236_v46, %v236_v46 }
 0x24f   :  { %v242_v49 = vsel %vm225_vm2, %v238_v48, 0.0 }
 0x250   :  { %243 = vadd.xlane.f32.xlu1 %v242_v49 }
 0x2d9   :  { %v241_v56 = vpop.xlane.xlu0 %240 }
 0x2da   :  { %v245_v57 = vmul.f32 0.03125, %v241_v56 }
 0x2dc   :  { %v247_v58 = vadd.f32 1e-12, %v245_v57 }
 0x2dd   :  { %v244_v59 = vpop.xlane.xlu1 %243 }
 0x2de   :  { %4208 = vrsqrt.f32 %v247_v58  ;;  %v246_v60 = vmul.f32 0.03125, %v244_v59 }
 0x2e0   :  { %v248_v61 = vadd.f32 1e-12, %v246_v60 }
 0x2e2   :  { %4210 = vrsqrt.f32 %v248_v61 }
 0x2e8   :  { %v4209_v62 = vpop.eup %4208 }
 0x2e9   :  { %v251_v0 = vmul.f32 %v4209_v62, %v235_v42 }
 0x2eb   :  { %v259_v2 = vmul.f32 %v3394_v63, %v251_v0 }
 0x2ec   :  { %v4211_v3 = vpop.eup %4210 }
 0x2ed   :  { %v252_v4 = vmul.f32 %v4211_v3, %v236_v46  ;;  %v4619_v5 = vadd.f32 %v3395_v1, %v259_v2 }
 0x2ef   :  { %v260_v6 = vmul.f32 %v3394_v63, %v252_v4  ;;  %3693 = vmatprep.mubr.msk.f32.mxu1 %vm225_vm2, %v4619_v5 }
 0x2f1   :  { %v4623_v7 = vadd.f32 %v3395_v1, %v260_v6 }
 0x2f3   :  { %3694 = vmatmul.mubr.msk.f32.vlgmr.msra.gmra.mrb[0].mxu1 %vm225_vm2, %v4623_v7 }
 0x3c6   :  { %v3695_v9 = vpop.f32.mrb[0].mxu1 }
 0x3c7   :  { %v4630_v10 = vadd.f32 %v3695_v9, %v3396_v8  ;;  %v358_v11 = vpop.f32.mrb[1].mxu1 }
 0x3c8   :  { %v4632_v12 = vadd.f32 %v3396_v8, %v358_v11 }
 0x3ca   :  { %3700 = vmatprep.mubr.msk.f32.mxu1 %vm373_vm3, %v4632_v12  ;;  %v4638_v13 = vpack.i.bf16 %v4630_v10, %v4632_v12 }
 0x3cc   :  { %4129 = vrot.lane.b32.xlu1 %v4638_v13, %s4404_s5 }
 0x43e   :  { %v4130_v14 = vpop.permute.xlu1 %4129 }
 0x43f   :  { %v4132_v15 = vunpack.i.h.bf16 %v4130_v14  ;;  %v4131_v16 = vunpack.i.l.bf16 %v4130_v14 }
 0x441   :  { %v3959_v18 = vpack.c.bf16 %v4132_v15, %v4131_v16  ;;  %v276_v15 = vld [vmem:[#allocation4 + $0x8] sm:$0xff] }
 0x443   :  { %3961 = vmatprep.subr.msk.bf16.mxu1 %vm4644_vm4, %v3959_v18 }
 0x444   :  { %3964 = vmatpush3.bf16.xpose.msk.msra.mxu1 %vm4644_vm4, %v3959_v18 }
 0x44b   :  { %3701 = vmatmul.mubr.msk.f32.vlgmr.msra.gmra.mrb[2].mxu1 %vm373_vm3, %v4630_v10 }
 0x51e   :  { %v3702_v21 = vpop.f32.mrb[2].mxu1 }
 0x51f   :  { %v454_v22 = vadd.f32 %v3702_v21, %v4657_v19  ;;  %v448_v23 = vpop.f32.mrb[3].mxu1 }
 0x520   :  { %v449_v24 = vadd.f32 %v448_v23, %v4662_v20 }
 0x521   :  { %v461_v25 = vsel %vm457_vm5, %v454_v22, -inf }
 0x522   :  { %462 = vmax.xlane.f32.xlu0 %v461_v25  ;;  %v458_v26 = vsel %vm457_vm5, %v449_v24, -inf  ;;  %v275_v25 = vld [vmem:[#allocation4] sm:$0xff] }
 0x523   :  { %459 = vmax.xlane.f32.xlu1 %v458_v26 }
 0x534   :  { %4139 = vrot.lane.b32.xlu1 %v4638_v13, %s4405_s25 }
 0x538   :  { %4134 = vrot.lane.b32.xlu0 %v4638_v13, %s4406_s0 }
 0x5af   :  { %v463_v27 = vpop.xlane.xlu0 %462 }
 0x5b0   :  { %v465_v28 = vsub.f32 %v454_v22, %v463_v27  ;;  %v460_v29 = vpop.xlane.xlu1 %459 }
 0x5b1   :  { %v464_v30 = vsub.f32 %v449_v24, %v460_v29 }
 0x5b2   :  { %v468_v31 = vmul.f32 1.442695, %v465_v28 }
 0x5b3   :  { %v466_v32 = vmul.f32 1.442695, %v464_v30  ;;  %v4135_v33 = vpop.permute.xlu0 %4134 }
 0x5b4   :  { %4212 = vpow2.f32 %v468_v31  ;;  %v4137_v34 = vunpack.i.h.bf16 %v4135_v33  ;;  %v4136_v35 = vunpack.i.l.bf16 %v4135_v33  ;;  %v4140_v36 = vpop.permute.xlu1 %4139 }
 0x5b5   :  { %v4142_v37 = vunpack.i.h.bf16 %v4140_v36  ;;  %v4141_v38 = vunpack.i.l.bf16 %v4140_v36  ;;  %4214 = vpow2.f32 %v466_v32 }
 0x5b6   :  { %v3965_v39 = vpack.c.bf16 %v4137_v34, %v4136_v35 }
 0x5b7   :  { %v3969_v40 = vpack.c.bf16 %v4142_v37, %v4141_v38 }
 0x5b8   :  { %3966 = vmatprep.subr.bf16.mxu1 %v3965_v39 }
 0x5b9   :  { %3968 = vmatpush3.bf16.msra.mxu1 %v3965_v39 }
 0x5ba   :  { %3971 = vmatprep.subr.msk.bf16.mxu1 %vm4644_vm4, %v3969_v40 }
 0x5be   :  { %v4213_v41 = vpop.eup %4212 }
 0x5bf   :  { %v473_v42 = vsel %vm457_vm5, %v4213_v41, 0.0  ;;  %v4215_v43 = vpop.eup %4214 }
 0x5c0   :  { %474 = vadd.xlane.f32.xlu0 %v473_v42  ;;  %v470_v44 = vsel %vm457_vm5, %v4215_v43, 0.0 }
 0x5c4   :  { %471 = vadd.xlane.f32.xlu0 %v470_v44 }
 0x5da   :  { %567 = vrot.lane.b32.xlu0 %v4632_v12, %s4407_s3 }
 0x5de   :  { %569 = vrot.lane.b32.xlu0 %v4630_v10, %s4407_s3 }
 0x64d   :  { %v475_v45 = vpop.xlane.xlu0 %474 }
 0x64e   :  { %4216 = vrcp.f32 %v475_v45 }
 0x651   :  { %v472_v46 = vpop.xlane.xlu0 %471 }
 0x652   :  { %4218 = vrcp.f32 %v472_v46 }
 0x655   :  { %v568_v51 = vpop.permute.xlu0 %567 }
 0x658   :  { %v4217_v47 = vpop.eup %4216 }
 0x659   :  { %v479_v50 = vmul.f32 %v4217_v47, %v4213_v41  ;;  %v570_v52 = vpop.permute.xlu0 %569 }
 0x65c   :  { %v4219_v48 = vpop.eup %4218 }
 0x65d   :  { %v477_v49 = vmul.f32 %v4219_v48, %v4215_v43 }
 0x65f   :  { %3707 = vmatprep.mubr.msk.f32.mxu1 %vm457_vm5, %v477_v49 }
 0x660   :  { %3708 = vmatmul.mubr.msk.f32.vlgmr.msra.gmra.mrb[4].mxu1 %vm457_vm5, %v479_v50 }
 0x661   :  { %3974 = vmatpush3.bf16.xpose.msk.msra.mxu1 %vm4644_vm4, %v3969_v40  ;;  %3714 = vmatprep.mubr.msk.f32.mxu1 %vm373_vm3, %v568_v51 }
 0x668   :  { %3715 = vmatmul.mubr.msk.f32.vlgmr.msra.gmra.mrb[6].mxu1 %vm373_vm3, %v570_v52 }
 0x733   :  { %v4686_v53 = vpop.f32.mrb[4].mxu1 }
 0x734   :  { %v4688_v54 = vpop.f32.mrb[5].mxu1 }
 0x73b   :  { %v3716_v55 = vpop.f32.mrb[6].mxu1 }
 0x73c   :  { %v655_v56 = vadd.f32 %v3716_v55, %v4657_v19  ;;  %v649_v57 = vpop.f32.mrb[7].mxu1 }
 0x73d   :  { %v650_v58 = vadd.f32 %v649_v57, %v4662_v20 }
 0x73e   :  { %v661_v59 = vsel %vm457_vm5, %v655_v56, -inf }
 0x73f   :  { %662 = vmax.xlane.f32.xlu1 %v661_v59  ;;  %v658_v60 = vsel %vm457_vm5, %v650_v58, -inf }
 0x740   :  { %659 = vmax.xlane.f32.xlu0 %v658_v60 }
 0x750   :  { %4144 = vrot.lane.b32.xlu1 %v4638_v13, %s4408_s28 }
 0x754   :  { %929 = vrot.lane.b32.xlu1 %v4632_v12, %s4409_s26 }
 0x758   :  { %931 = vrot.lane.b32.xlu1 %v4630_v10, %s4409_s26 }
 0x75c   :  { %1212 = vrot.lane.b32.xlu1 %v4632_v12, %s4410_s18 }
 0x7cc   :  { %v663_v61 = vpop.xlane.xlu1 %662 }
 0x7cd   :  { %v665_v62 = vsub.f32 %v655_v56, %v663_v61  ;;  %v660_v63 = vpop.xlane.xlu0 %659 }
 0x7ce   :  { %v664_v0 = vsub.f32 %v650_v58, %v660_v63 }
 0x7cf   :  { %v668_v1 = vmul.f32 1.442695, %v665_v62 }
 0x7d0   :  { %v666_v2 = vmul.f32 1.442695, %v664_v0  ;;  %v4145_v3 = vpop.permute.xlu1 %4144 }
 0x7d1   :  { %v4147_v4 = vunpack.i.h.bf16 %v4145_v3  ;;  %v4146_v6 = vunpack.i.l.bf16 %v4145_v3 }
 0x7d2   :  { %4220 = vpow2.f32 %v666_v2 }
 0x7d3   :  { %v3975_v8 = vpack.c.bf16 %v4147_v4, %v4146_v6  ;;  %4222 = vpow2.f32 %v668_v1 }
 0x7d4   :  { %v930_v32 = vpop.permute.xlu1 %929 }
 0x7d5   :  { %3976 = vmatprep.subr.bf16.mxu1 %v3975_v8 }
 0x7d6   :  { %3978 = vmatpush3.bf16.msra.mxu1 %v3975_v8 }
 0x7d7   :  { %3724 = vmatprep.subr.mxu1 %v276_v15 }
 0x7d8   :  { %v932_v36 = vpop.permute.xlu1 %931 }
 0x7dc   :  { %v4221_v9 = vpop.eup %4220  ;;  %v1213_v37 = vpop.permute.xlu1 %1212 }
 0x7dd   :  { %v670_v11 = vsel %vm457_vm5, %v4221_v9, 0.0  ;;  %v4223_v14 = vpop.eup %4222 }
 0x7de   :  { %671 = vadd.xlane.f32.xlu0 %v670_v11  ;;  %v673_v12 = vsel %vm457_vm5, %v4223_v14, 0.0 }
 0x7e2   :  { %674 = vadd.xlane.f32.xlu0 %v673_v12 }
 0x7f8   :  { %4149 = vrot.lane.b32.xlu0 %v4638_v13, %s4411_s29 }
 0x7fc   :  { %4154 = vrot.lane.b32.xlu0 %v4638_v13, %s4412_s1 }
 0x800   :  { %1214 = vrot.lane.b32.xlu0 %v4630_v10, %s4410_s18 }
 0x86b   :  { %v672_v16 = vpop.xlane.xlu0 %671 }
 0x86c   :  { %4224 = vrcp.f32 %v672_v16 }
 0x86f   :  { %v675_v18 = vpop.xlane.xlu0 %674 }
 0x870   :  { %4226 = vrcp.f32 %v675_v18 }
 0x873   :  { %v4150_v26 = vpop.permute.xlu0 %4149 }
 0x874   :  { %v4152_v27 = vunpack.i.h.bf16 %v4150_v26  ;;  %v4151_v28 = vunpack.i.l.bf16 %v4150_v26  ;;  %v277_v26 = vld [vmem:[#allocation4 + $0x10] sm:$0xff] }
 0x876   :  { %v4225_v21 = vpop.eup %4224  ;;  %v3979_v30 = vpack.c.bf16 %v4152_v27, %v4151_v28 }
 0x877   :  { %v677_v22 = vmul.f32 %v4225_v21, %v4221_v9  ;;  %v4155_v31 = vpop.permute.xlu0 %4154 }
 0x878   :  { %v4157_v33 = vunpack.i.h.bf16 %v4155_v31  ;;  %v4156_v34 = vunpack.i.l.bf16 %v4155_v31 }
 0x879   :  { %3721 = vmatprep.mubr.msk.f32.mxu1 %vm457_vm5, %v677_v22 }
 0x87a   :  { %v4227_v23 = vpop.eup %4226  ;;  %v3989_v35 = vpack.c.bf16 %v4157_v33, %v4156_v34 }
 0x87b   :  { %v679_v24 = vmul.f32 %v4227_v23, %v4223_v14  ;;  %v1215_v38 = vpop.permute.xlu0 %1214 }
 0x87d   :  { %3722 = vmatmul.mubr.msk.f32.vlgmr.msra.gmra.mrb[8].mxu1 %vm457_vm5, %v679_v24 }
 0x87e   :  { %3725 = vmatpush3.msra.mxu1 %v276_v15 }
 0x87f   :  { %3729 = vmatprep.subr.mxu1 %v275_v25 }
 0x950   :  { %v3723_v29 = vpop.f32.mrb[8].mxu1 }
 0x951   :  { %v758_v10 = vpop.f32.mrb[9].mxu1 }
 0x952   :  { %3726 = vmatprep.mubr.msk.f32.mxu1 %vm373_vm3, %v758_v10 }
 0x953   :  { %3727 = vmatmul.mubr.msk.f32.vlgmr.msra.gmra.mrb[10].mxu1 %vm373_vm3, %v3723_v29 }
 0x954   :  { %3730 = vmatpush3.msra.mxu1 %v275_v25  ;;  %3731 = vmatprep.mubr.msk.f32.mxu1 %vm373_vm3, %v4688_v54 }
 0x955   :  { %3981 = vmatprep.subr.msk.bf16.mxu1 %vm4644_vm4, %v3979_v30 }
 0x95b   :  { %3732 = vmatmul.mubr.msk.f32.vlgmr.msra.gmra.mrb[10].mxu1 %vm373_vm3, %v4686_v53 }
 0x95c   :  { %3984 = vmatpush3.bf16.xpose.msk.msra.mxu1 %vm4644_vm4, %v3979_v30  ;;  %3738 = vmatprep.mubr.msk.f32.mxu1 %vm373_vm3, %v930_v32 }
 0x95d   :  { %3991 = vmatprep.subr.msk.bf16.mxu1 %vm4644_vm4, %v3989_v35 }
 0x963   :  { %3739 = vmatmul.mubr.msk.f32.vlgmr.msra.gmra.mrb[12].mxu1 %vm373_vm3, %v932_v36 }
 0x964   :  { %3994 = vmatpush3.bf16.xpose.msk.msra.mxu1 %vm4644_vm4, %v3989_v35  ;;  %3757 = vmatprep.mubr.msk.f32.mxu1 %vm373_vm3, %v1213_v37 }
 0x96b   :  { %3758 = vmatmul.mubr.msk.f32.vlgmr.msra.gmra.mrb[14].mxu1 %vm373_vm3, %v1215_v38 }
 0xa2e   :  { %v4730_v39 = vpop.f32.mrb[10].mxu1 }
 0xa2f   :  { %v4732_v40 = vpop.f32.mrb[11].mxu1 }
 0xa36   :  { %v3740_v41 = vpop.f32.mrb[12].mxu1 }
 0xa37   :  { %v1017_v42 = vadd.f32 %v3740_v41, %v4657_v19  ;;  %v1011_v43 = vpop.f32.mrb[13].mxu1 }
 0xa38   :  { %v1012_v44 = vadd.f32 %v1011_v43, %v4662_v20  ;;  %v3431_v43 = vld [vmem:[%s4979_s9] ss:$0 sm:$0xff] }
 0xa39   :  { %v1023_v45 = vsel %vm457_vm5, %v1017_v42, -inf }
 0xa3a   :  { %1024 = vmax.xlane.f32.xlu0 %v1023_v45  ;;  %v1020_v46 = vsel %vm457_vm5, %v1012_v44, -inf }
 0xa3b   :  { %1021 = vmax.xlane.f32.xlu1 %v1020_v46 }
 0xa3e   :  { %v3759_v47 = vpop.f32.mrb[14].mxu1 }
 0xa3f   :  { %v1294_v48 = vpop.f32.mrb[15].mxu1  ;;  %v1300_v60 = vadd.f32 %v3759_v47, %v4657_v19 }
 0xa40   :  { %v1295_v57 = vadd.f32 %v1294_v48, %v4662_v20 }
 0xa41   :  { %v1306_v62 = vsel %vm457_vm5, %v1300_v60, -inf }
 0xa42   :  { %v1303_v61 = vsel %vm457_vm5, %v1295_v57, -inf }
 0xac7   :  { %v1025_v49 = vpop.xlane.xlu0 %1024 }
 0xac8   :  { %v1027_v50 = vsub.f32 %v1017_v42, %v1025_v49  ;;  %v1022_v51 = vpop.xlane.xlu1 %1021 }
 0xac9   :  { %v1026_v52 = vsub.f32 %v1012_v44, %v1022_v51 }
 0xaca   :  { %v1030_v53 = vmul.f32 1.442695, %v1027_v50 }
 0xacb   :  { %v1028_v54 = vmul.f32 1.442695, %v1026_v52 }
 0xacc   :  { %4228 = vpow2.f32 %v1030_v53 }
 0xacd   :  { %4230 = vpow2.f32 %v1028_v54 }
 0xad6   :  { %v4229_v55 = vpop.eup %4228 }
 0xad7   :  { %v4231_v56 = vpop.eup %4230  ;;  %v1035_v58 = vsel %vm457_vm5, %v4229_v55, 0.0 }
 0xad8   :  { %1036 = vadd.xlane.f32.xlu1 %v1035_v58  ;;  %v1032_v59 = vsel %vm457_vm5, %v4231_v56, 0.0 }
 0xad9   :  { %1033 = vadd.xlane.f32.xlu0 %v1032_v59 }
 0xadc   :  { %1304 = vmax.xlane.f32.xlu1 %v1303_v61 }
 0xae0   :  { %1307 = vmax.xlane.f32.xlu1 %v1306_v62  ;;  %v1552_v62 = vld [vmem:[#allocation6 + $0x10] sm:$0xff] }
 0xaef   :  { %4159 = vrot.lane.b32.xlu0 %v4638_v13, %s4413_s20 }
 0xb65   :  { %v1037_v63 = vpop.xlane.xlu1 %1036 }
 0xb66   :  { %4232 = vrcp.f32 %v1037_v63  ;;  %v1034_v0 = vpop.xlane.xlu0 %1033  ;;  %v1553_v63 = vld [vmem:[#allocation6 + $0x18] sm:$0xff] }
 0xb67   :  { %4234 = vrcp.f32 %v1034_v0  ;;  %v4003_v0 = vpack.c.bf16 %v1553_v63, %v1552_v62 }
 0xb69   :  { %v1305_v1 = vpop.xlane.xlu1 %1304 }
 0xb6a   :  { %v4160_v2 = vpop.permute.xlu0 %4159  ;;  %v1309_v6 = vsub.f32 %v1295_v57, %v1305_v1 }
 0xb6b   :  { %v4162_v3 = vunpack.i.h.bf16 %v4160_v2  ;;  %v4161_v4 = vunpack.i.l.bf16 %v4160_v2 }
 0xb6c   :  { %v1311_v12 = vmul.f32 1.442695, %v1309_v6 }
 0xb6d   :  { %v3985_v8 = vpack.c.bf16 %v4162_v3, %v4161_v4  ;;  %v1308_v9 = vpop.xlane.xlu1 %1307 }
 0xb6e   :  { %v1310_v11 = vsub.f32 %v1300_v60, %v1308_v9  ;;  %v1551_v60 = vld [vmem:[#allocation6 + $0x8] sm:$0xff] }
 0xb6f   :  { %3986 = vmatprep.subr.bf16.mxu0 %v3985_v8 }
 0xb70   :  { %v4233_v14 = vpop.eup %4232  ;;  %v1313_v15 = vmul.f32 1.442695, %v1310_v11  ;;  %3988 = vmatpush3.bf16.msra.mxu0 %v3985_v8  ;;  %v3432_v11 = vld [vmem:[%s4980_s10] ss:$0 sm:$0xff] }
 0xb71   :  { %v4235_v16 = vpop.eup %4234  ;;  %v1041_v21 = vmul.f32 %v4233_v14, %v4229_v55  ;;  %3748 = vmatprep.subr.mxu0 %v277_v26 }
 0xb72   :  { %4236 = vpow2.f32 %v1313_v15  ;;  %v1039_v18 = vmul.f32 %v4235_v16, %v4231_v56 }
 0xb73   :  { %4238 = vpow2.f32 %v1311_v12  ;;  %v3433_v12 = vld [vmem:[%s4981_s11] ss:$0 sm:$0xff] }
 0xb74   :  { %3745 = vmatprep.mubr.msk.f32.mxu0 %vm457_vm5, %v1039_v18 }
 0xb75   :  { %3746 = vmatmul.mubr.msk.f32.vlgmr.msra.gmra.mrb[2].mxu0 %vm457_vm5, %v1041_v21 }
 0xb76   :  { %3749 = vmatpush3.msra.mxu0 %v277_v26 }
 0xb7c   :  { %v4237_v22 = vpop.eup %4236 }
 0xb7d   :  { %v1318_v23 = vsel %vm457_vm5, %v4237_v22, 0.0  ;;  %v4239_v24 = vpop.eup %4238 }
 0xb7e   :  { %1319 = vadd.xlane.f32.xlu1 %v1318_v23  ;;  %v1315_v25 = vsel %vm457_vm5, %v4239_v24, 0.0 }
 0xb82   :  { %1316 = vadd.xlane.f32.xlu1 %v1315_v25  ;;  %v1661_v25 = vld [vmem:[#allocation7 + $0x8] sm:$0xff] }
 0xb93   :  { %4164 = vrot.lane.b32.xlu1 %v4638_v13, %s4414_s21  ;;  %v278_v13 = vld [vmem:[#allocation4 + $0x18] sm:$0xff] }
 0xc0b   :  { %v1320_v27 = vpop.xlane.xlu1 %1319 }
 0xc0f   :  { %v1317_v28 = vpop.xlane.xlu1 %1316 }
 0xc10   :  { %4240 = vrcp.f32 %v1317_v28  ;;  %v1663_v28 = vld [vmem:[#allocation7 + $0x18] sm:$0xff] }
 0xc11   :  { %4242 = vrcp.f32 %v1320_v27  ;;  %v1662_v27 = vld [vmem:[#allocation7 + $0x10] sm:$0xff] }
 0xc13   :  { %v4165_v29 = vpop.permute.xlu1 %4164 }
 0xc14   :  { %v4167_v10 = vunpack.i.h.bf16 %v4165_v29  ;;  %v4166_v30 = vunpack.i.l.bf16 %v4165_v29  ;;  %v4011_v29 = vpack.c.bf16 %v1663_v28, %v1662_v27 }
 0xc16   :  { %v3995_v31 = vpack.c.bf16 %v4167_v10, %v4166_v30  ;;  %v1664_v10 = vld [vmem:[#allocation7 + $0x20] sm:$0xff]  ;;  %v1665_v30 = vld [vmem:[#allocation7 + $0x28] sm:$0xff] }
 0xc18   :  { %3996 = vmatprep.subr.bf16.mxu0 %v3995_v31 }
 0xc1a   :  { %v4241_v32 = vpop.eup %4240 }
 0xc1b   :  { %v4243_v35 = vpop.eup %4242  ;;  %v1322_v36 = vmul.f32 %v4241_v32, %v4239_v24  ;;  %v1660_v24 = vld [vmem:[#allocation7] sm:$0xff]  ;;  %v1666_v32 = vld [vmem:[#allocation7 + $0x30] sm:$0xff] }
 0xc1c   :  { %v1324_v37 = vmul.f32 %v4243_v35, %v4237_v22  ;;  %v4007_v26 = vpack.c.bf16 %v1661_v25, %v1660_v24  ;;  %v3434_v35 = vld [vmem:[%s4983_s13] ss:$0 sm:$0xff] }
 0xc48   :  { %v3747_v33 = vpop.f32.mrb[2].mxu0 }
 0xc49   :  { %v1120_v34 = vpop.f32.mrb[3].mxu0 }
 0xc4a   :  { %3750 = vmatprep.mubr.msk.f32.mxu0 %vm373_vm3, %v1120_v34 }
 0xc4b   :  { %3751 = vmatmul.mubr.msk.f32.vlgmr.msra.gmra.mrb[4].mxu0 %vm373_vm3, %v3747_v33  ;;  %v1667_v33 = vld [vmem:[#allocation7 + $0x38] sm:$0xff] }
 0xc4c   :  { %3998 = vmatpush3.bf16.msra.mxu0 %v3995_v31  ;;  %3764 = vmatprep.mubr.msk.f32.mxu0 %vm457_vm5, %v1322_v36  ;;  %v4015_v31 = vpack.c.bf16 %v1665_v30, %v1664_v10  ;;  %v4019_v34 = vpack.c.bf16 %v1667_v33, %v1666_v32  ;;  %v3440_v10 = vld [vmem:[%s4986_s16] ss:$0 sm:$0xff] }
 0xc4d   :  { %3767 = vmatprep.subr.mxu0 %v278_v13 }
 0xc4f   :  { %3765 = vmatmul.mubr.msk.f32.vlgmr.msra.gmra.mrb[6].mxu0 %vm457_vm5, %v1324_v37 }
 0xc50   :  { %3768 = vmatpush3.msra.mxu0 %v278_v13 }
 0xc51   :  { %4008 = vmatprep.subr.bf16.mxu0 %v4007_v26 }
 0xd22   :  { %v3766_v38 = vpop.f32.mrb[6].mxu0 }
 0xd23   :  { %v1403_v41 = vpop.f32.mrb[7].mxu0 }
 0xd24   :  { %3769 = vmatprep.mubr.msk.f32.mxu0 %vm373_vm3, %v1403_v41 }
 0xd25   :  { %3770 = vmatmul.mubr.msk.f32.vlgmr.msra.gmra.mrb[4].mxu0 %vm373_vm3, %v3766_v38 }
 0xd26   :  { %4010 = vmatpush3.bf16.msra.mxu0 %v4007_v26 }
 0xd27   :  { %4012 = vmatprep.subr.bf16.mxu0 %v4011_v29 }
 0xd2a   :  { %4014 = vmatpush3.bf16.msra.mxu0 %v4011_v29 }
 0xd2b   :  { %4016 = vmatprep.subr.bf16.mxu0 %v4015_v31 }
 0xd2e   :  { %4018 = vmatpush3.bf16.msra.mxu0 %v4015_v31  ;;  %v3441_v31 = vld [vmem:[%s4987_s17] ss:$0 sm:$0xff] }
 0xd2f   :  { %4020 = vmatprep.subr.bf16.mxu0 %v4019_v34 }
 0xd32   :  { %4022 = vmatpush3.bf16.msra.mxu0 %v4019_v34 }
 0xdf8   :  { %v3771_v42 = vpop.f32.mrb[4].mxu0 }
 0xdf9   :  { %v4095_v44 = vadd.f32 %v3771_v42, %v4730_v39  ;;  %v1484_v45 = vpop.f32.mrb[5].mxu0 }
 0xdfa   :  { %v4096_v46 = vadd.f32 %v1484_v45, %v4732_v40 }
 0xdfb   :  { %v1503_v47 = vadd.f32 %v4095_v44, %v3431_v43 }
 0xdfc   :  { %v1502_v48 = vadd.f32 %v4096_v46, %v3431_v43 }
 0xdfd   :  { %v1505_v49 = vadd.f32 %v1503_v47, %v4623_v7 }
 0xdfe   :  { %v1504_v50 = vadd.f32 %v1502_v48, %v4619_v5  ;;  %v1550_v5 = vld [vmem:[#allocation6] sm:$0xff] }
 0xdff   :  { %v1511_v51 = vsel %vm225_vm2, %v1505_v49, 0.0  ;;  %v3999_v61 = vpack.c.bf16 %v1551_v60, %v1550_v5 }
 0xe00   :  { %1512 = vadd.xlane.f32.xlu1 %v1511_v51  ;;  %v1508_v52 = vsel %vm225_vm2, %v1504_v50, 0.0 }
 0xe01   :  { %1509 = vadd.xlane.f32.xlu0 %v1508_v52  ;;  %4000 = vmatprep.subr.bf16.mxu1 %v3999_v61 }
 0xe02   :  { %4002 = vmatpush3.bf16.msra.mxu1 %v3999_v61 }
 0xe03   :  { %4004 = vmatprep.subr.bf16.mxu1 %v4003_v0 }
 0xe06   :  { %4006 = vmatpush3.bf16.msra.mxu1 %v4003_v0 }
 0xe8d   :  { %v1513_v53 = vpop.xlane.xlu1 %1512 }
 0xe8e   :  { %v1515_v54 = vmul.f32 0.03125, %v1513_v53  ;;  %v1510_v55 = vpop.xlane.xlu0 %1509 }
 0xe8f   :  { %v1514_v56 = vmul.f32 0.03125, %v1510_v55 }
 0xe90   :  { %v1517_v39 = vsub.f32 %v1505_v49, %v1515_v54 }
 0xe91   :  { %v1516_v57 = vsub.f32 %v1504_v50, %v1514_v56 }
 0xe92   :  { %v1519_v59 = vmul.f32 %v1517_v39, %v1517_v39 }
 0xe93   :  { %v1518_v58 = vmul.f32 %v1516_v57, %v1516_v57 }
 0xe94   :  { %v1523_v7 = vsel %vm225_vm2, %v1519_v59, 0.0 }
 0xe95   :  { %v1520_v40 = vsel %vm225_vm2, %v1518_v58, 0.0  ;;  %v3437_v58 = vld [vmem:[%s4985_s15] ss:$0 sm:$0xff] }
 0xe96   :  { %1521 = vadd.xlane.f32.xlu0 %v1520_v40 }
 0xe9a   :  { %1524 = vadd.xlane.f32.xlu0 %v1523_v7 }
 0xf23   :  { %v1522_v1 = vpop.xlane.xlu0 %1521 }
 0xf24   :  { %v1526_v2 = vmul.f32 0.03125, %v1522_v1 }
 0xf26   :  { %v1528_v3 = vadd.f32 1e-12, %v1526_v2 }
 0xf27   :  { %v1525_v4 = vpop.xlane.xlu0 %1524 }
 0xf28   :  { %4244 = vrsqrt.f32 %v1528_v3  ;;  %v1527_v6 = vmul.f32 0.03125, %v1525_v4 }
 0xf2a   :  { %v1529_v8 = vadd.f32 1e-12, %v1527_v6 }
 0xf2c   :  { %4246 = vrsqrt.f32 %v1529_v8 }
 0xf32   :  { %v4245_v9 = vpop.eup %4244 }
 0xf33   :  { %v1532_v14 = vmul.f32 %v4245_v9, %v1516_v57 }
 0xf35   :  { %v1540_v15 = vmul.f32 %v3432_v11, %v1532_v14 }
 0xf36   :  { %v4247_v16 = vpop.eup %4246 }
 0xf37   :  { %v1533_v18 = vmul.f32 %v4247_v16, %v1517_v39  ;;  %v1548_v21 = vadd.f32 %v3433_v12, %v1540_v15  ;;  %v3443_v15 = vld [vmem:[%s4976_s6 + $0x28] sm:$0xff] }
 0xf39   :  { %v1541_v22 = vmul.f32 %v3432_v11, %v1533_v18  ;;  %3780 = vmatprep.mubr.msk.f32.mxu1 %vm225_vm2, %v1548_v21  ;;  %v3444_v18 = vld [vmem:[%s4976_s6 + $0x30] sm:$0xff] }
 0xf3b   :  { %v1549_v23 = vadd.f32 %v3433_v12, %v1541_v22  ;;  %v3442_v12 = vld [vmem:[%s4976_s6 + $0x20] sm:$0xff] }
 0xf3c   :  { %v4023_v16 = vpack.c.bf16 %v3443_v15, %v3442_v12 }
 0xf3d   :  { %3781 = vmatmul.mubr.msk.f32.vlgmr.msra.gmra.mrb[16].mxu1 %vm225_vm2, %v1549_v23 }
 0xf3e   :  { %4024 = vmatprep.subr.bf16.mxu1 %v4023_v16 }
 0xf3f   :  { %4026 = vmatpush3.bf16.msra.mxu1 %v4023_v16 }
0x1010   :  { %v3782_v36 = vpop.f32.mrb[16].mxu1 }
0x1011   :  { %v1639_v13 = vadd.f32 %v3782_v36, %v3434_v35  ;;  %v1633_v37 = vpop.f32.mrb[17].mxu1 }
0x1012   :  { %v1634_v38 = vadd.f32 %v3434_v35, %v1633_v37  ;;  %v3447_v37 = vld [vmem:[%s4977_s7 + $0x1] ss:$0 sm:$0xff] }
0x1013   :  { %v1645_v41 = vmul.f32 0.044715, %v1639_v13  ;;  %v1643_v56 = vmul.f32 0.5, %v1639_v13 }
0x1014   :  { %v1644_v42 = vmul.f32 0.044715, %v1634_v38  ;;  %v1642_v54 = vmul.f32 0.5, %v1634_v38 }
0x1015   :  { %v1647_v43 = vmul.f32 %v1645_v41, %v1639_v13 }
0x1016   :  { %v1646_v44 = vmul.f32 %v1644_v42, %v1634_v38 }
0x1017   :  { %v1649_v45 = vmul.f32 %v1647_v43, %v1639_v13 }
0x1018   :  { %v1648_v46 = vmul.f32 %v1646_v44, %v1634_v38 }
0x1019   :  { %v1651_v47 = vadd.f32 %v1649_v45, %v1639_v13 }
0x101a   :  { %v1650_v48 = vadd.f32 %v1648_v46, %v1634_v38 }
0x101b   :  { %v1653_v49 = vmul.f32 0.7978846, %v1651_v47 }
0x101c   :  { %v1652_v50 = vmul.f32 0.7978846, %v1650_v48 }
0x101d   :  { %4248 = vtanh.f32 %v1653_v49 }
0x101e   :  { %4250 = vtanh.f32 %v1652_v50 }
0x1027   :  { %v4249_v51 = vpop.eup %4248 }
0x1028   :  { %v4251_v52 = vpop.eup %4250  ;;  %v1657_v53 = vadd.f32 1.0, %v4249_v51 }
0x1029   :  { %v1656_v55 = vadd.f32 1.0, %v4251_v52 }
0x102a   :  { %v1659_v57 = vmul.f32 %v1657_v53, %v1643_v56 }
0x102b   :  { %v1658_v39 = vmul.f32 %v1656_v55, %v1642_v54 }
0x102d   :  { %3799 = vmatprep.mubr.msk.f32.mxu0 %vm1675_vm6, %v1658_v39 }
0x102e   :  { %3800 = vmatmul.mubr.msk.f32.vlgmr.msra.gmra.mrb[8].mxu0 %vm1675_vm6, %v1659_v57 }
0x1101   :  { %v3801_v40 = vpop.f32.mrb[8].mxu0 }
0x1102   :  { %v1748_v59 = vpop.f32.mrb[9].mxu0  ;;  %v1754_v7 = vadd.f32 %v3801_v40, %v3437_v58 }
0x1103   :  { %v1749_v5 = vadd.f32 %v3437_v58, %v1748_v59 }
0x1104   :  { %v1758_v62 = vadd.f32 %v1754_v7, %v1549_v23 }
0x1105   :  { %v1757_v60 = vadd.f32 %v1749_v5, %v1548_v21  ;;  %v3445_v21 = vld [vmem:[%s4976_s6 + $0x38] sm:$0xff] }
0x1106   :  { %v1764_v63 = vsel %vm225_vm2, %v1758_v62, 0.0  ;;  %v4027_v22 = vpack.c.bf16 %v3445_v21, %v3444_v18 }
0x1107   :  { %v1761_v61 = vsel %vm225_vm2, %v1757_v60, 0.0 }
0x1108   :  { %1762 = vadd.xlane.f32.xlu0 %v1761_v61  ;;  %4028 = vmatprep.subr.bf16.mxu1 %v4027_v22 }
0x1109   :  { %4030 = vmatpush3.bf16.msra.mxu1 %v4027_v22 }
0x110c   :  { %1765 = vadd.xlane.f32.xlu0 %v1764_v63 }
0x1195   :  { %v1763_v0 = vpop.xlane.xlu0 %1762 }
0x1196   :  { %v1767_v1 = vmul.f32 0.03125, %v1763_v0 }
0x1198   :  { %v1769_v2 = vsub.f32 %v1757_v60, %v1767_v1 }
0x1199   :  { %v1766_v3 = vpop.xlane.xlu0 %1765 }
0x119a   :  { %v1768_v4 = vmul.f32 0.03125, %v1766_v3  ;;  %v1771_v6 = vmul.f32 %v1769_v2, %v1769_v2 }
0x119c   :  { %v1770_v8 = vsub.f32 %v1758_v62, %v1768_v4  ;;  %v1773_v9 = vsel %vm225_vm2, %v1771_v6, 0.0 }
0x119d   :  { %1774 = vadd.xlane.f32.xlu0 %v1773_v9 }
0x119e   :  { %v1772_v11 = vmul.f32 %v1770_v8, %v1770_v8 }
0x11a0   :  { %v1776_v14 = vsel %vm225_vm2, %v1772_v11, 0.0 }
0x11a1   :  { %1777 = vadd.xlane.f32.xlu1 %v1776_v14 }
0x122a   :  { %v1775_v23 = vpop.xlane.xlu0 %1774 }
0x122b   :  { %v1779_v24 = vmul.f32 0.03125, %v1775_v23 }
0x122d   :  { %v1781_v25 = vadd.f32 1e-12, %v1779_v24 }
0x122e   :  { %v1778_v26 = vpop.xlane.xlu1 %1777 }
0x122f   :  { %4252 = vrsqrt.f32 %v1781_v25  ;;  %v1780_v27 = vmul.f32 0.03125, %v1778_v26 }
0x1231   :  { %v1782_v28 = vadd.f32 1e-12, %v1780_v27 }
0x1233   :  { %4254 = vrsqrt.f32 %v1782_v28 }
0x1239   :  { %v4253_v29 = vpop.eup %4252 }
0x123a   :  { %v1785_v30 = vmul.f32 %v4253_v29, %v1769_v2 }
0x123c   :  { %v1793_v32 = vmul.f32 %v3440_v10, %v1785_v30 }
0x123d   :  { %v4255_v33 = vpop.eup %4254 }
0x123e   :  { %v1786_v34 = vmul.f32 %v4255_v33, %v1770_v8  ;;  %v4807_v35 = vadd.f32 %v3441_v31, %v1793_v32 }
0x1240   :  { %v1794_v36 = vmul.f32 %v3440_v10, %v1786_v34  ;;  %3810 = vmatprep.mubr.msk.f32.mxu1 %vm225_vm2, %v4807_v35 }
0x1242   :  { %v4811_v13 = vadd.f32 %v3441_v31, %v1794_v36 }
0x1244   :  { %3811 = vmatmul.mubr.msk.f32.vlgmr.msra.gmra.mrb[18].mxu1 %vm225_vm2, %v4811_v13 }
0x1317   :  { %v3812_v38 = vpop.f32.mrb[18].mxu1 }
0x1318   :  { %v4818_v41 = vadd.f32 %v3812_v38, %v3447_v37  ;;  %v1893_v42 = vpop.f32.mrb[19].mxu1 }
0x1319   :  { %v4820_v43 = vadd.f32 %v3447_v37, %v1893_v42 }
0x131b   :  { %3817 = vmatprep.mubr.msk.f32.mxu1 %vm373_vm3, %v4820_v43  ;;  %v4826_v44 = vpack.i.bf16 %v4818_v41, %v4820_v43 }
0x131d   :  { %4174 = vrot.lane.b32.xlu1 %v4826_v44, %s4405_s25  ;;  %4169 = vrot.lane.b32.xlu0 %v4826_v44, %s4404_s5 }
0x1321   :  { %2100 = vrot.lane.b32.xlu1 %v4820_v43, %s4407_s3  ;;  %2102 = vrot.lane.b32.xlu0 %v4818_v41, %s4407_s3 }
0x1325   :  { %4179 = vrot.lane.b32.xlu1 %v4826_v44, %s4411_s29  ;;  %2462 = vrot.lane.b32.xlu0 %v4820_v43, %s4409_s26 }
0x1329   :  { %2464 = vrot.lane.b32.xlu1 %v4818_v41, %s4409_s26 }
0x138f   :  { %v4175_v45 = vpop.permute.xlu1 %4174  ;;  %v4170_v46 = vpop.permute.xlu0 %4169 }
0x1390   :  { %v4177_v47 = vunpack.i.h.bf16 %v4175_v45  ;;  %v4176_v48 = vunpack.i.l.bf16 %v4175_v45  ;;  %v4172_v49 = vunpack.i.h.bf16 %v4170_v46  ;;  %v4171_v50 = vunpack.i.l.bf16 %v4170_v46 }
0x1392   :  { %v4031_v51 = vpack.c.bf16 %v4172_v49, %v4171_v50  ;;  %v4041_v53 = vpack.c.bf16 %v4177_v47, %v4176_v48 }
0x1393   :  { %v2101_v52 = vpop.permute.xlu1 %2100  ;;  %v2103_v57 = vpop.permute.xlu0 %2102 }
0x1394   :  { %4033 = vmatprep.subr.msk.bf16.mxu1 %vm4644_vm4, %v4031_v51 }
0x1395   :  { %4036 = vmatpush3.bf16.xpose.msk.msra.mxu1 %vm4644_vm4, %v4031_v51 }
0x1396   :  { %4043 = vmatprep.subr.msk.bf16.mxu1 %vm4644_vm4, %v4041_v53 }
0x1397   :  { %v4180_v54 = vpop.permute.xlu1 %4179  ;;  %v2463_v58 = vpop.permute.xlu0 %2462 }
0x1398   :  { %v4182_v55 = vunpack.i.h.bf16 %v4180_v54  ;;  %v4181_v56 = vunpack.i.l.bf16 %v4180_v54 }
0x139a   :  { %v4051_v39 = vpack.c.bf16 %v4182_v55, %v4181_v56 }
0x139b   :  { %v2465_v40 = vpop.permute.xlu1 %2464 }
0x139c   :  { %3818 = vmatmul.mubr.msk.f32.vlgmr.msra.gmra.mrb[20].mxu1 %vm373_vm3, %v4818_v41 }
0x139d   :  { %4046 = vmatpush3.bf16.xpose.msk.msra.mxu1 %vm4644_vm4, %v4041_v53  ;;  %3831 = vmatprep.mubr.msk.f32.mxu1 %vm373_vm3, %v2101_v52 }
0x139e   :  { %4053 = vmatprep.subr.msk.bf16.mxu1 %vm4644_vm4, %v4051_v39 }
0x13a4   :  { %3832 = vmatmul.mubr.msk.f32.vlgmr.msra.gmra.mrb[22].mxu1 %vm373_vm3, %v2103_v57 }
0x13a5   :  { %4056 = vmatpush3.bf16.xpose.msk.msra.mxu1 %vm4644_vm4, %v4051_v39  ;;  %3855 = vmatprep.mubr.msk.f32.mxu1 %vm373_vm3, %v2463_v58 }
0x13ac   :  { %3856 = vmatmul.mubr.msk.f32.vlgmr.msra.gmra.mrb[24].mxu1 %vm373_vm3, %v2465_v40 }
0x146f   :  { %v3819_v59 = vpop.f32.mrb[20].mxu1 }
0x1470   :  { %v1988_v7 = vadd.f32 %v3819_v59, %v4657_v19  ;;  %v1982_v5 = vpop.f32.mrb[21].mxu1 }
0x1471   :  { %v1983_v60 = vadd.f32 %v1982_v5, %v4662_v20 }
0x1472   :  { %v1994_v61 = vsel %vm457_vm5, %v1988_v7, -inf }
0x1473   :  { %1995 = vmax.xlane.f32.xlu1 %v1994_v61  ;;  %v1991_v62 = vsel %vm457_vm5, %v1983_v60, -inf }
0x1474   :  { %1992 = vmax.xlane.f32.xlu0 %v1991_v62 }
0x1477   :  { %v3833_v63 = vpop.f32.mrb[22].mxu1 }
0x1478   :  { %v2182_v0 = vpop.f32.mrb[23].mxu1  ;;  %v2188_v2 = vadd.f32 %v3833_v63, %v4657_v19 }
0x1479   :  { %v2183_v1 = vadd.f32 %v2182_v0, %v4662_v20 }
0x147a   :  { %v2194_v6 = vsel %vm457_vm5, %v2188_v2, -inf }
0x147b   :  { %v2191_v3 = vsel %vm457_vm5, %v2183_v1, -inf }
0x147c   :  { %2192 = vmax.xlane.f32.xlu0 %v2191_v3 }
0x147f   :  { %v3857_v4 = vpop.f32.mrb[24].mxu1 }
0x1480   :  { %v2544_v8 = vpop.f32.mrb[25].mxu1  ;;  %2195 = vmax.xlane.f32.xlu0 %v2194_v6  ;;  %v2550_v33 = vadd.f32 %v3857_v4, %v4657_v19 }
0x1481   :  { %v2545_v34 = vadd.f32 %v2544_v8, %v4662_v20  ;;  %v1810_v8 = vld [vmem:[#allocation4 + $0x28] sm:$0xff] }
0x1482   :  { %v2556_v37 = vsel %vm457_vm5, %v2550_v33, -inf }
0x1483   :  { %v2553_v36 = vsel %vm457_vm5, %v2545_v34, -inf }
0x1500   :  { %v1996_v9 = vpop.xlane.xlu1 %1995 }
0x1501   :  { %v1998_v11 = vsub.f32 %v1988_v7, %v1996_v9  ;;  %v1993_v14 = vpop.xlane.xlu0 %1992  ;;  %v1809_v9 = vld [vmem:[#allocation4 + $0x20] sm:$0xff] }
0x1502   :  { %v1997_v12 = vsub.f32 %v1983_v60, %v1993_v14 }
0x1503   :  { %v2001_v15 = vmul.f32 1.442695, %v1998_v11 }
0x1504   :  { %v1999_v16 = vmul.f32 1.442695, %v1997_v12 }
0x1505   :  { %4256 = vpow2.f32 %v2001_v15 }
0x1506   :  { %4258 = vpow2.f32 %v1999_v16 }
0x1509   :  { %v2193_v18 = vpop.xlane.xlu0 %2192 }
0x150a   :  { %v2197_v21 = vsub.f32 %v2183_v1, %v2193_v18 }
0x150c   :  { %v2199_v22 = vmul.f32 1.442695, %v2197_v21 }
0x150d   :  { %v2196_v23 = vpop.xlane.xlu0 %2195 }
0x150e   :  { %4260 = vpow2.f32 %v2199_v22  ;;  %v2198_v24 = vsub.f32 %v2188_v2, %v2196_v23 }
0x150f   :  { %v4257_v25 = vpop.eup %4256 }
0x1510   :  { %v4259_v26 = vpop.eup %4258  ;;  %v2201_v27 = vmul.f32 1.442695, %v2198_v24  ;;  %v2006_v28 = vsel %vm457_vm5, %v4257_v25, 0.0 }
0x1511   :  { %2007 = vadd.xlane.f32.xlu0 %v2006_v28  ;;  %v2003_v29 = vsel %vm457_vm5, %v4259_v26, 0.0  ;;  %v4300_v28 = vld [vmem:[%s5000_s8] sm:$0xff] }
0x1512   :  { %4262 = vpow2.f32 %v2201_v27  ;;  %2004 = vadd.xlane.f32.xlu1 %v2003_v29 }
0x1518   :  { %v4261_v10 = vpop.eup %4260 }
0x1519   :  { %v2203_v30 = vsel %vm457_vm5, %v4261_v10, 0.0 }
0x151a   :  { %2204 = vadd.xlane.f32.xlu1 %v2203_v30 }
0x151c   :  { %v4263_v31 = vpop.eup %4262 }
0x151d   :  { %v2206_v32 = vsel %vm457_vm5, %v4263_v31, 0.0 }
0x151e   :  { %2207 = vadd.xlane.f32.xlu0 %v2206_v32 }
0x152b   :  { %4184 = vrot.lane.b32.xlu1 %v4826_v44, %s4406_s0 }
0x152f   :  { %4194 = vrot.lane.b32.xlu1 %v4826_v44, %s4412_s1 }
0x1533   :  { %2745 = vrot.lane.b32.xlu1 %v4820_v43, %s4410_s18 }
0x1534   :  { %4189 = vrot.lane.b32.xlu0 %v4826_v44, %s4408_s28 }
0x1538   :  { %2747 = vrot.lane.b32.xlu0 %v4818_v41, %s4410_s18 }
0x1557   :  { %2554 = vmax.xlane.f32.xlu1 %v2553_v36  ;;  %2557 = vmax.xlane.f32.xlu0 %v2556_v37  ;;  %v1811_v37 = vld [vmem:[#allocation4 + $0x30] sm:$0xff] }
0x159e   :  { %v2008_v42 = vpop.xlane.xlu0 %2007 }
0x159f   :  { %v2005_v38 = vpop.xlane.xlu1 %2004 }
0x15a0   :  { %4264 = vrcp.f32 %v2005_v38 }
0x15a1   :  { %4266 = vrcp.f32 %v2008_v42 }
0x15a7   :  { %v2205_v43 = vpop.xlane.xlu1 %2204 }
0x15a8   :  { %4268 = vrcp.f32 %v2205_v43 }
0x15aa   :  { %v4265_v45 = vpop.eup %4264 }
0x15ab   :  { %v4185_v46 = vpop.permute.xlu1 %4184  ;;  %v2208_v47 = vpop.xlane.xlu0 %2207  ;;  %v2010_v41 = vmul.f32 %v4265_v45, %v4259_v26 }
0x15ac   :  { %v4187_v48 = vunpack.i.h.bf16 %v4185_v46  ;;  %v4186_v19 = vunpack.i.l.bf16 %v4185_v46  ;;  %4270 = vrcp.f32 %v2208_v47  ;;  %v4267_v49 = vpop.eup %4266 }
0x15ad   :  { %3824 = vmatprep.mubr.msk.f32.mxu0 %vm457_vm5, %v2010_v41  ;;  %v2012_v39 = vmul.f32 %v4267_v49, %v4257_v25 }
0x15ae   :  { %v4037_v20 = vpack.c.bf16 %v4187_v48, %v4186_v19 }
0x15af   :  { %v4195_v50 = vpop.permute.xlu1 %4194  ;;  %v4190_v51 = vpop.permute.xlu0 %4189 }
0x15b0   :  { %v4197_v52 = vunpack.i.h.bf16 %v4195_v50  ;;  %v4196_v53 = vunpack.i.l.bf16 %v4195_v50  ;;  %v4192_v54 = vunpack.i.h.bf16 %v4190_v51  ;;  %v4191_v55 = vunpack.i.l.bf16 %v4190_v51  ;;  %4038 = vmatprep.subr.bf16.mxu0 %v4037_v20 }
0x15b1   :  { %4040 = vmatpush3.bf16.msra.mxu0 %v4037_v20 }
0x15b2   :  { %v4269_v56 = vpop.eup %4268  ;;  %v4061_v57 = vpack.c.bf16 %v4197_v52, %v4196_v53  ;;  %v4047_v58 = vpack.c.bf16 %v4192_v54, %v4191_v55 }
0x15b3   :  { %v2746_v40 = vpop.permute.xlu1 %2745  ;;  %v2210_v59 = vmul.f32 %v4269_v56, %v4261_v10  ;;  %v2748_v60 = vpop.permute.xlu0 %2747  ;;  %v4301_v10 = vld [vmem:[%s5000_s8 + $0x8] sm:$0xff] }
0x15b4   :  { %3825 = vmatmul.mubr.msk.f32.vlgmr.msra.gmra.mrb[10].mxu0 %vm457_vm5, %v2012_v39  ;;  %4048 = vmatprep.subr.bf16.mxu0 %v4047_v58  ;;  %v1812_v39 = vld [vmem:[#allocation4 + $0x38] sm:$0xff] }
0x15b5   :  { %4063 = vmatprep.subr.msk.bf16.mxu1 %vm4644_vm4, %v4061_v57  ;;  %3874 = vmatprep.mubr.msk.f32.mxu1 %vm373_vm3, %v2746_v40 }
0x15b6   :  { %v4271_v7 = vpop.eup %4270  ;;  %4050 = vmatpush3.bf16.msra.mxu0 %v4047_v58  ;;  %3838 = vmatprep.mubr.msk.f32.mxu0 %vm457_vm5, %v2210_v59 }
0x15b7   :  { %v2212_v5 = vmul.f32 %v4271_v7, %v4263_v31  ;;  %4066 = vmatpush3.bf16.xpose.msk.msra.mxu1 %vm4644_vm4, %v4061_v57  ;;  %3841 = vmatprep.subr.mxu0 %v1810_v8 }
0x15b9   :  { %3839 = vmatmul.mubr.msk.f32.vlgmr.msra.gmra.mrb[12].mxu0 %vm457_vm5, %v2212_v5  ;;  %v3483_v5 = vld [vmem:[%s4979_s9 + $0x1] ss:$0 sm:$0xff] }
0x15ba   :  { %3842 = vmatpush3.msra.mxu0 %v1810_v8 }
0x15bb   :  { %3846 = vmatprep.subr.mxu0 %v1809_v9 }
0x15be   :  { %3875 = vmatmul.mubr.msk.f32.vlgmr.msra.gmra.mrb[26].mxu1 %vm373_vm3, %v2748_v60 }
0x15e4   :  { %v2555_v61 = vpop.xlane.xlu1 %2554  ;;  %v2558_v62 = vpop.xlane.xlu0 %2557 }
0x15e5   :  { %v2559_v63 = vsub.f32 %v2545_v34, %v2555_v61  ;;  %v2560_v0 = vsub.f32 %v2550_v33, %v2558_v62 }
0x15e7   :  { %v2561_v1 = vmul.f32 1.442695, %v2559_v63  ;;  %v2563_v2 = vmul.f32 1.442695, %v2560_v0 }
0x15e9   :  { %4272 = vpow2.f32 %v2561_v1 }
0x15ea   :  { %4274 = vpow2.f32 %v2563_v2 }
0x15f3   :  { %v4273_v3 = vpop.eup %4272 }
0x15f4   :  { %v4275_v4 = vpop.eup %4274  ;;  %v2565_v6 = vsel %vm457_vm5, %v4273_v3, 0.0 }
0x15f5   :  { %2566 = vadd.xlane.f32.xlu0 %v2565_v6  ;;  %v2568_v17 = vsel %vm457_vm5, %v4275_v4, 0.0 }
0x15f6   :  { %2569 = vadd.xlane.f32.xlu1 %v2568_v17 }
0x160b   :  { %4199 = vrot.lane.b32.xlu0 %v4826_v44, %s4413_s20 }
0x1682   :  { %v2567_v11 = vpop.xlane.xlu0 %2566 }
0x1683   :  { %v2570_v16 = vpop.xlane.xlu1 %2569  ;;  %4276 = vrcp.f32 %v2567_v11 }
0x1684   :  { %4278 = vrcp.f32 %v2570_v16  ;;  %v3088_v16 = vld [vmem:[#allocation6 + $0x28] sm:$0xff] }
0x1686   :  { %v4200_v12 = vpop.permute.xlu0 %4199 }
0x1687   :  { %v3826_v14 = vpop.f32.mrb[10].mxu0  ;;  %v4202_v18 = vunpack.i.h.bf16 %v4200_v12  ;;  %v4201_v21 = vunpack.i.l.bf16 %v4200_v12 }
0x1688   :  { %v2091_v15 = vpop.f32.mrb[11].mxu0 }
0x1689   :  { %v4057_v24 = vpack.c.bf16 %v4202_v18, %v4201_v21  ;;  %v3089_v21 = vld [vmem:[#allocation6 + $0x30] sm:$0xff] }
0x168c   :  { %v3840_v22 = vpop.f32.mrb[12].mxu0 }
0x168d   :  { %v2291_v23 = vpop.f32.mrb[13].mxu0  ;;  %v4277_v27 = vpop.eup %4276 }
0x168e   :  { %3843 = vmatprep.mubr.msk.f32.mxu0 %vm373_vm3, %v2291_v23  ;;  %v4279_v32 = vpop.eup %4278  ;;  %v2572_v33 = vmul.f32 %v4277_v27, %v4273_v3 }
0x168f   :  { %3844 = vmatmul.mubr.msk.f32.vlgmr.msra.gmra.mrb[14].mxu0 %vm373_vm3, %v3840_v22  ;;  %v2574_v34 = vmul.f32 %v4279_v32, %v4275_v4  ;;  %v3090_v22 = vld [vmem:[#allocation6 + $0x38] sm:$0xff] }
0x1690   :  { %3847 = vmatpush3.msra.mxu0 %v1809_v9  ;;  %3848 = vmatprep.mubr.msk.f32.mxu0 %vm373_vm3, %v2091_v15  ;;  %v4075_v23 = vpack.c.bf16 %v3090_v22, %v3089_v21  ;;  %v3487_v32 = vld [vmem:[%s4981_s11 + $0x1] ss:$0 sm:$0xff] }
0x1691   :  { %v3876_v25 = vpop.f32.mrb[26].mxu1  ;;  %4058 = vmatprep.subr.bf16.mxu0 %v4057_v24 }
0x1692   :  { %v2827_v26 = vpop.f32.mrb[27].mxu1  ;;  %v2833_v30 = vadd.f32 %v4301_v10, %v3876_v25 }
0x1693   :  { %v2828_v29 = vadd.f32 %v4300_v28, %v2827_v26 }
0x1694   :  { %v2839_v36 = vsel %vm457_vm5, %v2833_v30, -inf }
0x1695   :  { %v2836_v31 = vsel %vm457_vm5, %v2828_v29, -inf }
0x1696   :  { %2837 = vmax.xlane.f32.xlu1 %v2836_v31 }
0x1697   :  { %3849 = vmatmul.mubr.msk.f32.vlgmr.msra.gmra.mrb[14].mxu0 %vm373_vm3, %v3826_v14 }
0x1698   :  { %4060 = vmatpush3.bf16.msra.mxu0 %v4057_v24  ;;  %3862 = vmatprep.mubr.msk.f32.mxu0 %vm457_vm5, %v2572_v33 }
0x1699   :  { %3865 = vmatprep.subr.mxu0 %v1811_v37 }
0x169a   :  { %2840 = vmax.xlane.f32.xlu1 %v2839_v36 }
0x169b   :  { %3863 = vmatmul.mubr.msk.f32.vlgmr.msra.gmra.mrb[16].mxu0 %vm457_vm5, %v2574_v34 }
0x169c   :  { %3866 = vmatpush3.msra.mxu0 %v1811_v37 }
0x1723   :  { %v2838_v38 = vpop.xlane.xlu1 %2837 }
0x1724   :  { %v2842_v42 = vsub.f32 %v2828_v29, %v2838_v38 }
0x1726   :  { %v2844_v46 = vmul.f32 1.442695, %v2842_v42 }
0x1727   :  { %v2841_v43 = vpop.xlane.xlu1 %2840 }
0x1728   :  { %v2843_v45 = vsub.f32 %v2833_v30, %v2841_v43  ;;  %v3486_v30 = vld [vmem:[%s4980_s10 + $0x1] ss:$0 sm:$0xff]  ;;  %v3199_v43 = vld [vmem:[#allocation7 + $0x40] sm:$0xff] }
0x172a   :  { %v2846_v47 = vmul.f32 1.442695, %v2843_v45  ;;  %v3200_v45 = vld [vmem:[#allocation7 + $0x48] sm:$0xff] }
0x172c   :  { %4280 = vpow2.f32 %v2846_v47  ;;  %v3201_v47 = vld [vmem:[#allocation7 + $0x50] sm:$0xff] }
0x172d   :  { %4282 = vpow2.f32 %v2844_v46  ;;  %v4079_v46 = vpack.c.bf16 %v3200_v45, %v3199_v43 }
0x1736   :  { %v4281_v41 = vpop.eup %4280 }
0x1737   :  { %v2851_v48 = vsel %vm457_vm5, %v4281_v41, 0.0  ;;  %v4283_v19 = vpop.eup %4282 }
0x1738   :  { %2852 = vadd.xlane.f32.xlu1 %v2851_v48  ;;  %v2848_v20 = vsel %vm457_vm5, %v4283_v19, 0.0  ;;  %v3203_v48 = vld [vmem:[#allocation7 + $0x60] sm:$0xff] }
0x173c   :  { %2849 = vadd.xlane.f32.xlu1 %v2848_v20  ;;  %v3204_v20 = vld [vmem:[#allocation7 + $0x68] sm:$0xff] }
0x174d   :  { %4204 = vrot.lane.b32.xlu1 %v4826_v44, %s4414_s21 }
0x176e   :  { %v3864_v49 = vpop.f32.mrb[16].mxu0 }
0x176f   :  { %v2653_v50 = vpop.f32.mrb[17].mxu0 }
0x1770   :  { %3867 = vmatprep.mubr.msk.f32.mxu0 %vm373_vm3, %v2653_v50  ;;  %v3205_v50 = vld [vmem:[#allocation7 + $0x70] sm:$0xff] }
0x1771   :  { %3868 = vmatmul.mubr.msk.f32.vlgmr.msra.gmra.mrb[14].mxu0 %vm373_vm3, %v3864_v49  ;;  %v4087_v49 = vpack.c.bf16 %v3204_v20, %v3203_v48 }
0x17c5   :  { %v2853_v51 = vpop.xlane.xlu1 %2852 }
0x17c6   :  { %4284 = vrcp.f32 %v2853_v51  ;;  %v3206_v51 = vld [vmem:[#allocation7 + $0x78] sm:$0xff] }
0x17c9   :  { %v2850_v52 = vpop.xlane.xlu1 %2849 }
0x17ca   :  { %4286 = vrcp.f32 %v2850_v52  ;;  %v4091_v52 = vpack.c.bf16 %v3206_v51, %v3205_v50 }
0x17cd   :  { %v4205_v53 = vpop.permute.xlu1 %4204 }
0x17ce   :  { %v4207_v54 = vunpack.i.h.bf16 %v4205_v53  ;;  %v4206_v55 = vunpack.i.l.bf16 %v4205_v53  ;;  %v3489_v53 = vld [vmem:[%s4983_s13 + $0x1] ss:$0 sm:$0xff] }
0x17d0   :  { %v4067_v56 = vpack.c.bf16 %v4207_v54, %v4206_v55  ;;  %v4285_v57 = vpop.eup %4284 }
0x17d1   :  { %v2857_v40 = vmul.f32 %v4285_v57, %v4281_v41  ;;  %v3202_v41 = vld [vmem:[#allocation7 + $0x58] sm:$0xff] }
0x17d2   :  { %4068 = vmatprep.subr.bf16.mxu0 %v4067_v56 }
0x17d3   :  { %4070 = vmatpush3.bf16.msra.mxu0 %v4067_v56 }
0x17d4   :  { %v4287_v58 = vpop.eup %4286  ;;  %3884 = vmatprep.subr.mxu0 %v1812_v39 }
0x17d5   :  { %v2855_v44 = vmul.f32 %v4287_v58, %v4283_v19  ;;  %v4083_v19 = vpack.c.bf16 %v3202_v41, %v3201_v47 }
0x17d7   :  { %3881 = vmatprep.mubr.msk.f32.mxu0 %vm457_vm5, %v2855_v44 }
0x17d8   :  { %3882 = vmatmul.mubr.msk.f32.vlgmr.msra.gmra.mrb[18].mxu0 %vm457_vm5, %v2857_v40 }
0x17d9   :  { %3885 = vmatpush3.msra.mxu0 %v1812_v39 }
0x17da   :  { %4080 = vmatprep.subr.bf16.mxu0 %v4079_v46 }
0x18ab   :  { %v3883_v59 = vpop.f32.mrb[18].mxu0 }
0x18ac   :  { %v2936_v7 = vpop.f32.mrb[19].mxu0 }
0x18ad   :  { %3886 = vmatprep.mubr.msk.f32.mxu0 %vm373_vm3, %v2936_v7 }
0x18ae   :  { %3887 = vmatmul.mubr.msk.f32.vlgmr.msra.gmra.mrb[14].mxu0 %vm373_vm3, %v3883_v59 }
0x18af   :  { %4082 = vmatpush3.bf16.msra.mxu0 %v4079_v46 }
0x18b0   :  { %4084 = vmatprep.subr.bf16.mxu0 %v4083_v19 }
0x18b3   :  { %4086 = vmatpush3.bf16.msra.mxu0 %v4083_v19 }
0x18b4   :  { %4088 = vmatprep.subr.bf16.mxu0 %v4087_v49 }
0x18b7   :  { %4090 = vmatpush3.bf16.msra.mxu0 %v4087_v49 }
0x18b8   :  { %4092 = vmatprep.subr.bf16.mxu0 %v4091_v52 }
0x18bb   :  { %4094 = vmatpush3.bf16.msra.mxu0 %v4091_v52 }
0x1981   :  { %v3888_v60 = vpop.f32.mrb[14].mxu0 }
0x1982   :  { %v3037_v61 = vadd.f32 %v3888_v60, %v3483_v5  ;;  %v3017_v62 = vpop.f32.mrb[15].mxu0 }
0x1983   :  { %v3036_v63 = vadd.f32 %v3483_v5, %v3017_v62 }
0x1984   :  { %v3039_v0 = vadd.f32 %v3037_v61, %v4811_v13 }
0x1985   :  { %v3038_v1 = vadd.f32 %v3036_v63, %v4807_v35  ;;  %v3087_v35 = vld [vmem:[#allocation6 + $0x20] sm:$0xff] }
0x1986   :  { %v3047_v2 = vsel %vm225_vm2, %v3039_v0, 0.0  ;;  %v4071_v18 = vpack.c.bf16 %v3088_v16, %v3087_v35 }
0x1987   :  { %3048 = vadd.xlane.f32.xlu1 %v3047_v2  ;;  %v3044_v3 = vsel %vm225_vm2, %v3038_v1, 0.0 }
0x1988   :  { %3045 = vadd.xlane.f32.xlu0 %v3044_v3  ;;  %4072 = vmatprep.subr.bf16.mxu1 %v4071_v18 }
0x1989   :  { %4074 = vmatpush3.bf16.msra.mxu1 %v4071_v18 }
0x198a   :  { %4076 = vmatprep.subr.bf16.mxu1 %v4075_v23 }
0x198d   :  { %4078 = vmatpush3.bf16.msra.mxu1 %v4075_v23 }
0x1a14   :  { %v3049_v4 = vpop.xlane.xlu1 %3048 }
0x1a15   :  { %v3051_v6 = vmul.f32 0.03125, %v3049_v4  ;;  %v3046_v17 = vpop.xlane.xlu0 %3045 }
0x1a16   :  { %v3050_v8 = vmul.f32 0.03125, %v3046_v17 }
0x1a17   :  { %v3053_v9 = vsub.f32 %v3039_v0, %v3051_v6 }
0x1a18   :  { %v3052_v11 = vsub.f32 %v3038_v1, %v3050_v8  ;;  %v3493_v8 = vld [vmem:[%s4985_s15 + $0x1] ss:$0 sm:$0xff] }
0x1a19   :  { %v3055_v15 = vmul.f32 %v3053_v9, %v3053_v9 }
0x1a1a   :  { %v3054_v14 = vmul.f32 %v3052_v11, %v3052_v11 }
0x1a1b   :  { %v3059_v13 = vsel %vm225_vm2, %v3055_v15, 0.0 }
0x1a1c   :  { %v3056_v12 = vsel %vm225_vm2, %v3054_v14, 0.0 }
0x1a1d   :  { %3057 = vadd.xlane.f32.xlu0 %v3056_v12 }
0x1a21   :  { %3060 = vadd.xlane.f32.xlu0 %v3059_v13 }
0x1aaa   :  { %v3058_v24 = vpop.xlane.xlu0 %3057 }
0x1aab   :  { %v3062_v25 = vmul.f32 0.03125, %v3058_v24 }
0x1aad   :  { %v3064_v26 = vadd.f32 1e-12, %v3062_v25 }
0x1aae   :  { %v3061_v27 = vpop.xlane.xlu0 %3060 }
0x1aaf   :  { %4288 = vrsqrt.f32 %v3064_v26  ;;  %v3063_v28 = vmul.f32 0.03125, %v3061_v27 }
0x1ab1   :  { %v3065_v29 = vadd.f32 1e-12, %v3063_v28 }
0x1ab3   :  { %4290 = vrsqrt.f32 %v3065_v29 }
0x1ab9   :  { %v4289_v10 = vpop.eup %4288 }
0x1aba   :  { %v3068_v31 = vmul.f32 %v4289_v10, %v3052_v11 }
0x1abc   :  { %v3076_v33 = vmul.f32 %v3486_v30, %v3068_v31 }
0x1abd   :  { %v4291_v34 = vpop.eup %4290 }
0x1abe   :  { %v3069_v36 = vmul.f32 %v4291_v34, %v3053_v9  ;;  %v3084_v37 = vadd.f32 %v3487_v32, %v3076_v33 }
0x1ac0   :  { %v3077_v38 = vmul.f32 %v3486_v30, %v3069_v36  ;;  %3897 = vmatprep.mubr.msk.f32.mxu1 %vm225_vm2, %v3084_v37 }
0x1ac2   :  { %v3085_v42 = vadd.f32 %v3487_v32, %v3077_v38 }
0x1ac4   :  { %3898 = vmatmul.mubr.msk.f32.vlgmr.msra.gmra.mrb[28].mxu1 %vm225_vm2, %v3085_v42 }
0x1b97   :  { %v3899_v54 = vpop.f32.mrb[28].mxu1 }
0x1b98   :  { %v3177_v55 = vadd.f32 %v3899_v54, %v3489_v53  ;;  %v3171_v56 = vpop.f32.mrb[29].mxu1 }
0x1b99   :  { %v3172_v39 = vadd.f32 %v3489_v53, %v3171_v56 }
0x1b9a   :  { %v3183_v57 = vmul.f32 0.044715, %v3177_v55  ;;  %v3181_v4 = vmul.f32 0.5, %v3177_v55 }
0x1b9b   :  { %v3182_v58 = vmul.f32 0.044715, %v3172_v39  ;;  %v3180_v2 = vmul.f32 0.5, %v3172_v39 }
0x1b9c   :  { %v3185_v44 = vmul.f32 %v3183_v57, %v3177_v55 }
0x1b9d   :  { %v3184_v40 = vmul.f32 %v3182_v58, %v3172_v39 }
0x1b9e   :  { %v3187_v59 = vmul.f32 %v3185_v44, %v3177_v55 }
0x1b9f   :  { %v3186_v7 = vmul.f32 %v3184_v40, %v3172_v39 }
0x1ba0   :  { %v3189_v5 = vadd.f32 %v3187_v59, %v3177_v55 }
0x1ba1   :  { %v3188_v60 = vadd.f32 %v3186_v7, %v3172_v39 }
0x1ba2   :  { %v3191_v61 = vmul.f32 0.7978846, %v3189_v5 }
0x1ba3   :  { %v3190_v62 = vmul.f32 0.7978846, %v3188_v60 }
0x1ba4   :  { %4292 = vtanh.f32 %v3191_v61 }
0x1ba5   :  { %4294 = vtanh.f32 %v3190_v62 }
0x1bae   :  { %v4293_v63 = vpop.eup %4292 }
0x1baf   :  { %v4295_v0 = vpop.eup %4294  ;;  %v3195_v1 = vadd.f32 1.0, %v4293_v63 }
0x1bb0   :  { %v3194_v3 = vadd.f32 1.0, %v4295_v0 }
0x1bb1   :  { %v3197_v17 = vmul.f32 %v3195_v1, %v3181_v4 }
0x1bb2   :  { %v3196_v6 = vmul.f32 %v3194_v3, %v3180_v2 }
0x1bb4   :  { %3916 = vmatprep.mubr.msk.f32.mxu0 %vm1675_vm6, %v3196_v6 }
0x1bb5   :  { %3917 = vmatmul.mubr.msk.f32.vlgmr.msra.gmra.mrb[20].mxu0 %vm1675_vm6, %v3197_v17 }
0x1c88   :  { %v3918_v9 = vpop.f32.mrb[20].mxu0 }
0x1c89   :  { %v3293_v11 = vadd.f32 %v3918_v9, %v3493_v8  ;;  %v3287_v14 = vpop.f32.mrb[21].mxu0 }
0x1c8a   :  { %v3288_v12 = vadd.f32 %v3493_v8, %v3287_v14 }
0x1c8b   :  { %v3297_v15 = vadd.f32 %v3293_v11, %v3085_v42  ;;  %v3499_v42 = vld [vmem:[%s4987_s17 + $0x1] ss:$0 sm:$0xff] }
0x1c8c   :  { %v3296_v35 = vadd.f32 %v3288_v12, %v3084_v37  ;;  %v3498_v37 = vld [vmem:[%s4986_s16 + $0x1] ss:$0 sm:$0xff] }
0x1c8d   :  { %v3305_v13 = vsel %vm225_vm2, %v3297_v15, 0.0 }
0x1c8e   :  { %3306 = vadd.xlane.f32.xlu0 %v3305_v13  ;;  %v3302_v16 = vsel %vm225_vm2, %v3296_v35, 0.0 }
0x1c92   :  { %3303 = vadd.xlane.f32.xlu0 %v3302_v16 }
0x1d1b   :  { %v3307_v18 = vpop.xlane.xlu0 %3306 }
0x1d1c   :  { %v3309_v21 = vmul.f32 0.03125, %v3307_v18 }
0x1d1e   :  { %v3311_v22 = vsub.f32 %v3297_v15, %v3309_v21 }
0x1d1f   :  { %v3304_v23 = vpop.xlane.xlu0 %3303 }
0x1d20   :  { %v3308_v24 = vmul.f32 0.03125, %v3304_v23  ;;  %v3313_v25 = vmul.f32 %v3311_v22, %v3311_v22 }
0x1d22   :  { %v3310_v26 = vsub.f32 %v3296_v35, %v3308_v24  ;;  %v3317_v27 = vsel %vm225_vm2, %v3313_v25, 0.0 }
0x1d23   :  { %3318 = vadd.xlane.f32.xlu0 %v3317_v27 }
0x1d24   :  { %v3312_v28 = vmul.f32 %v3310_v26, %v3310_v26 }
0x1d26   :  { %v3314_v29 = vsel %vm225_vm2, %v3312_v28, 0.0 }
0x1d27   :  { %3315 = vadd.xlane.f32.xlu1 %v3314_v29 }
0x1db0   :  { %v3319_v10 = vpop.xlane.xlu0 %3318 }
0x1db1   :  { %v3321_v30 = vmul.f32 0.03125, %v3319_v10 }
0x1db3   :  { %v3323_v31 = vadd.f32 1e-12, %v3321_v30 }
0x1db4   :  { %v3316_v32 = vpop.xlane.xlu1 %3315 }
0x1db5   :  { %4296 = vrsqrt.f32 %v3323_v31  ;;  %v3320_v33 = vmul.f32 0.03125, %v3316_v32 }
0x1db7   :  { %v3322_v34 = vadd.f32 1e-12, %v3320_v33 }
0x1db9   :  { %4298 = vrsqrt.f32 %v3322_v34 }
0x1dbf   :  { %v4297_v36 = vpop.eup %4296 }
0x1dc0   :  { %v3327_v38 = vmul.f32 %v4297_v36, %v3311_v22 }
0x1dc2   :  { %v3335_v43 = vmul.f32 %v3498_v37, %v3327_v38 }
0x1dc3   :  { %v4299_v45 = vpop.eup %4298 }
0x1dc4   :  { %v3326_v46 = vmul.f32 %v4299_v45, %v3310_v26  ;;  %v3343_v47 = vadd.f32 %v3499_v42, %v3335_v43 }
0x1dc6   :  { %v3366_v41 = vrot.slane %v3343_v47, 2  ;;  %v3362_v48 = vrot.slane %v3343_v47, 1  ;;  %v3334_v19 = vmul.f32 %v3498_v37, %v3326_v46  ;;  %v3370_v50 = vrot.slane %v3343_v47, 3 }
0x1dc8   :  { %3367 = vrot.lane.b32.xlu1 %v3366_v41, %s4406_s0  ;;  %3363 = vrot.lane.b32.xlu0 %v3362_v48, %s4415_s23  ;;  %v3342_v20 = vadd.f32 %v3499_v42, %v3334_v19 }
0x1dca   :  { %v3345_v49 = vrot.slane %v3342_v20, 1  ;;  %v3349_v51 = vrot.slane %v3342_v20, 2  ;;  %v3353_v52 = vrot.slane %v3342_v20, 3 }
0x1dcc   :  { %3346 = vrot.lane.b32.xlu1 %v3345_v49, %s4415_s23  ;;  %3371 = vrot.lane.b32.xlu0 %v3370_v50, %s4404_s5 }
0x1dd0   :  { %3350 = vrot.lane.b32.xlu1 %v3349_v51, %s4406_s0  ;;  %3354 = vrot.lane.b32.xlu0 %v3353_v52, %s4404_s5  ;;  %s5001_s5 = sld [smem:[#allocation15_spill]] }
0x1e3a   :  { %v3368_v53 = vpop.permute.xlu1 %3367  ;;  %v3364_v54 = vpop.permute.xlu0 %3363 }
0x1e3b   :  { %v3374_v55 = vsel %vm225_vm2, %v3343_v47, %v3364_v54 }
0x1e3c   :  { %v3375_v57 = vsel %vm1675_vm6, %v3374_v55, %v3368_v53 }
0x1e3e   :  { %v3347_v56 = vpop.permute.xlu1 %3346  ;;  %v3372_v39 = vpop.permute.xlu0 %3371 }
0x1e3f   :  { %v3376_v58 = vsel %vm3359_vm7, %v3375_v57, %v3372_v39  ;;  %v3357_v44 = vsel %vm225_vm2, %v3342_v20, %v3347_v56 }
0x1e40   :  { %v3378_v7 = vrot.slane %v3376_v58, 7 }
0x1e42   :  { %v3351_v40 = vpop.permute.xlu1 %3350  ;;  %v3355_v59 = vpop.permute.xlu0 %3354 }
0x1e43   :  { %v3358_v5 = vsel %vm1675_vm6, %v3357_v44, %v3351_v40 }
0x1e44   :  { %v3360_v60 = vsel %vm3359_vm7, %v3358_v5, %v3355_v59 }
0x1e45   :  { %v3381_v61 = vsel %vm3380_vm8, %v3360_v60, %v3378_v7 }
0x1e46   :  { %3382 = vst [vmem:[%s5001_s5] sm:$0x3] %v3381_v61 }
0x1e47   :  { %3387 = vsyncpa [#allocation3], 1 }
0x1e48   :  { %3388 = vsyncpa [#allocation5], 1 }
0x1e49   :  { %3389 = vsyncpa [#allocation8], 1 }

</bundles_post_ra>
